<compile_context>
chip_gen: v5e
topology: v5e:2x2
jax: 0.10.0
libtpu: 0.0.40
codegen_flags: <defaults>
</compile_context>

<pallas_src>
import math
from functools import partial

import jax
import jax.numpy as jnp
from jax.experimental import pallas as pl
from jax.experimental.pallas import tpu as pltpu


def _layernorm(x, g, b, eps=1e-5):
    mu = jnp.mean(x, axis=-1, keepdims=True)
    var = jnp.mean((x - mu) ** 2, axis=-1, keepdims=True)
    return (x - mu) * jax.lax.rsqrt(var + eps) * g + b


def mha_fusion_kernel(num_heads, d_head,
                      fs_ref, ft_ref,
                      wqv_ref, bqv_ref, wk_ref, bk_ref,
                      ln_g_ref, ln_b_ref, fln_g_ref, fln_b_ref,
                      wo_ref, bo_ref,
                      out_ref):
    Bb, N, E = fs_ref.shape
    R = Bb * N
    C = out_ref.shape[-1]

    fs = fs_ref[...]                               # [Bb, N, E] f32 (residual)
    ft = ft_ref[...]                               # [Bb, N, E] f32

    fs_rows = fs.reshape(R, E).astype(jnp.bfloat16)
    ft_rows = ft.reshape(R, E).astype(jnp.bfloat16)

    # --- Fused Q|V projection (same LHS) + K projection. bf16 operands, f32 acc.
    qv = jnp.dot(fs_rows, wqv_ref[...].astype(jnp.bfloat16),
                 preferred_element_type=jnp.float32) + bqv_ref[...]   # [R, 2E]
    k = jnp.dot(ft_rows, wk_ref[...].astype(jnp.bfloat16),
                preferred_element_type=jnp.float32) + bk_ref[...]     # [R, E]

    # Shared norm_layer (f32), applied row-wise on the flat slabs.
    g, b = ln_g_ref[...], ln_b_ref[...]
    q = _layernorm(qv[:, :E], g, b)
    v = _layernorm(qv[:, E:], g, b)
    k = _layernorm(k, g, b)

    # Scale q (N*E elements) instead of sim (H*N*N elements); cast to bf16 once
    # full-width (not per 8-lane head slice).
    scale = 1.0 / math.sqrt(float(E))              # torch divides by sqrt(d_model)
    q_bf = (q * scale).astype(jnp.bfloat16).reshape(Bb, N, E)
    k_bf = k.astype(jnp.bfloat16).reshape(Bb, N, E)
    v_bf = v.astype(jnp.bfloat16).reshape(Bb, N, E)

    # --- Multi-head attention with heads folded into the leading batch axis:
    # g = h * Bb + b.  One batched score matmul, ONE softmax, one attn·v matmul.
    def heads(x):
        return jnp.concatenate(
            [x[:, :, h * d_head:(h + 1) * d_head] for h in range(num_heads)],
            axis=0)                                # [H*Bb, N, d]

    qh, kh, vh = heads(q_bf), heads(k_bf), heads(v_bf)

    sim = jnp.einsum('gnd,gmd->gnm', qh, kh,
                     preferred_element_type=jnp.float32)              # [G, N, N]
    sim = sim - jnp.max(sim, axis=-1, keepdims=True)
    p = jnp.exp(sim)
    attn = (p / jnp.sum(p, axis=-1, keepdims=True)).astype(jnp.bfloat16)
    o = jnp.einsum('gnm,gmd->gnd', attn, vh,
                   preferred_element_type=jnp.float32)                # [G, N, d]

    # Re-assemble heads along the feature axis; stays in vregs (no scratch).
    wf = jnp.concatenate(
        [o[h * Bb:(h + 1) * Bb] for h in range(num_heads)], axis=-1)  # [Bb, N, E]

    # Residual + final LayerNorm (f32).
    wf = _layernorm(wf + fs, fln_g_ref[...], fln_b_ref[...])

    # TODO(synk): GAP1d is not defined in the provided snippet; implemented as a
    # global average pool over the token axis (the only shape-compatible reading
    # given out_layer = Linear(d_model, num_classes)).
    pooled = jnp.mean(wf, axis=1)                                     # [Bb, E]
    logits = jnp.dot(pooled, wo_ref[...],
                     preferred_element_type=jnp.float32) + bo_ref[...]
    out_ref[...] = logits.reshape(1, Bb, C)


def mha_fusion(feat_student, feat_teacher, params, num_heads, *, target_rows=2048):
    B, E, Hs, Ws = feat_student.shape
    N = Hs * Ws
    assert E % num_heads == 0, "d_model must be divisible by num_heads"
    d_head = E // num_heads

    # NCHW -> token-major [B, N, E].  TODO(synk): for ViT-scale N fold this
    # transpose into the kernel by contracting the channel axis directly.
    fs = feat_student.reshape(B, E, N).transpose(0, 2, 1)
    ft = feat_teacher[:, 1:, :]                    # strip CLS token
    assert ft.shape[1] == N, "torch.matmul(attn, value) requires Ns == Nt"
    C = params["wo"].shape[1]

    # Fused Q|V weight/bias (shared LHS inside the kernel).
    wqv = jnp.concatenate([params["wq"], params["wv"]], axis=1)       # [E, 2E]
    bqv = jnp.concatenate([params["bq"], params["bv"]], axis=1)       # [1, 2E]

    # Fold batch elements per block (amortize ~0.35us/step grid overhead, more
    # MXU rows per matmul), but keep >= 2 grid steps so both v7x TensorCores
    # get work (no-op on v5e/v6e).
    b_blk = max(1, min(B, target_rows // max(N, 1)))
    if B >= 2:
        b_blk = min(b_blk, -(-B // 2))             # ceil(B / 2)
    while B % b_blk:
        b_blk -= 1
    grid_b = B // b_blk

    param_list = [wqv, bqv, params["wk"], params["bk"],
                  params["ln_g"], params["ln_b"],
                  params["fln_g"], params["fln_b"],
                  params["wo"], params["bo"]]

    def tok_spec():
        return pl.BlockSpec((b_blk, N, E), lambda i: (i, 0, 0))

    def const_spec(p):
        # Constant index map: parameter tile is DMA'd once and stays resident.
        nd = p.ndim
        return pl.BlockSpec(p.shape, lambda i, _nd=nd: (0,) * _nd)

    out = pl.pallas_call(
        partial(mha_fusion_kernel, num_heads, d_head),
        out_shape=jax.ShapeDtypeStruct((grid_b, b_blk, C), jnp.float32),
        grid=(grid_b,),
        in_specs=[tok_spec(), tok_spec()] + [const_spec(p) for p in param_list],
        out_specs=pl.BlockSpec((1, b_blk, C), lambda i: (i, 0, 0)),
        compiler_params=pltpu.CompilerParams(
            dimension_semantics=("parallel",)),    # batch blocks are independent
    )(fs, ft, *param_list)
    return out.reshape(B, C)


def reference(feat_student, feat_teacher, params, num_heads):
    """Pure f32 JAX mirror of the PyTorch module."""
    B, E, _, _ = feat_student.shape
    fs = feat_student.reshape(B, E, -1).transpose(0, 2, 1)
    ft = feat_teacher[:, 1:, :]
    d_head = E // num_heads
    N = fs.shape[1]

    def ln(x, g, b, eps=1e-5):
        mu = x.mean(-1, keepdims=True)
        var = ((x - mu) ** 2).mean(-1, keepdims=True)
        return (x - mu) / jnp.sqrt(var + eps) * g + b

    q = ln(fs @ params["wq"] + params["bq"], params["ln_g"], params["ln_b"])
    k = ln(ft @ params["wk"] + params["bk"], params["ln_g"], params["ln_b"])
    v = ln(fs @ params["wv"] + params["bv"], params["ln_g"], params["ln_b"])
    qh = q.reshape(B, N, num_heads, d_head).transpose(0, 2, 1, 3)
    kh = k.reshape(B, N, num_heads, d_head).transpose(0, 2, 1, 3)
    vh = v.reshape(B, N, num_heads, d_head).transpose(0, 2, 1, 3)
    sim = jnp.einsum("bhnd,bhmd->bhnm", qh, kh) / jnp.sqrt(jnp.float32(E))
    attn = jax.nn.softmax(sim, axis=-1)
    wf = jnp.einsum("bhnm,bhmd->bhnd", attn, vh).transpose(0, 2, 1, 3).reshape(B, N, E)
    wf = ln(wf + fs, params["fln_g"], params["fln_b"])
    pooled = wf.mean(axis=1)
    return pooled @ params["wo"] + params["bo"]


if __name__ == "__main__":
    B, E, H, W = 2, 48, 4, 4
    num_heads, num_classes = 6, 10
    N = H * W

    key = jax.random.PRNGKey(0)
    ks = jax.random.split(key, 10)
    feat_student = jax.random.normal(ks[0], (B, E, H, W), jnp.float32)
    feat_teacher = jax.random.normal(ks[1], (B, N + 1, E), jnp.float32)

    def lin(kw, kb, din, dout):
        w = jax.random.normal(kw, (din, dout), jnp.float32) * (1.0 / math.sqrt(din))
        b = jax.random.normal(kb, (1, dout), jnp.float32) * 0.02
        return w, b

    wq, bq = lin(ks[2], ks[3], E, E)
    wk, bk = lin(ks[4], ks[5], E, E)
    wv, bv = lin(ks[6], ks[7], E, E)
    wo, bo = lin(ks[8], ks[9], E, num_classes)
    params = dict(
        wq=wq, bq=bq, wk=wk, bk=bk, wv=wv, bv=bv,
        ln_g=jnp.ones((1, E), jnp.float32), ln_b=jnp.zeros((1, E), jnp.float32),
        fln_g=jnp.ones((1, E), jnp.float32), fln_b=jnp.zeros((1, E), jnp.float32),
        wo=wo, bo=bo,
    )

    out = mha_fusion(feat_student, feat_teacher, params, num_heads)
    out = jax.block_until_ready(out)

    ref = reference(feat_student, feat_teacher, params, num_heads)
    assert out.shape == (B, num_classes)
    # Kernel uses bf16 MXU operands (f32 accumulation); softmax reciprocal is
    # exact, so the remaining error is bf16 operand rounding on the logits.
    max_err = jnp.max(jnp.abs(out - ref))
    assert jnp.allclose(out, ref, atol=2e-2, rtol=2e-2), f"max abs err {max_err}"
    print("KERNEL_OK")
</pallas_src>

<mosaic_0001>
module attributes {stable_mosaic.version = 11 : i64} {
  func.func @mha_fusion_kernel(%arg0: i32, %arg1: memref<1x16x48xf32, #tpu.memory_space<vmem>>, %arg2: memref<1x16x48xf32, #tpu.memory_space<vmem>>, %arg3: memref<48x96xf32, #tpu.memory_space<vmem>>, %arg4: memref<1x96xf32, #tpu.memory_space<vmem>>, %arg5: memref<48x48xf32, #tpu.memory_space<vmem>>, %arg6: memref<1x48xf32, #tpu.memory_space<vmem>>, %arg7: memref<1x48xf32, #tpu.memory_space<vmem>>, %arg8: memref<1x48xf32, #tpu.memory_space<vmem>>, %arg9: memref<1x48xf32, #tpu.memory_space<vmem>>, %arg10: memref<1x48xf32, #tpu.memory_space<vmem>>, %arg11: memref<48x10xf32, #tpu.memory_space<vmem>>, %arg12: memref<1x10xf32, #tpu.memory_space<vmem>>, %arg13: memref<1x1x10xf32, #tpu.memory_space<vmem>>) attributes {dimension_semantics = [#tpu.dimension_semantics<parallel>], iteration_bounds = array<i64: 2>, scalar_prefetch = 0 : i64, scratch_operands = 0 : i64, tpu.core_type = #tpu.core_type<tc>, window_params = [{transform_indices = @transform_0, window_bounds = array<i64: 1, 16, 48>}, {transform_indices = @transform_1, window_bounds = array<i64: 1, 16, 48>}, {pipeline_mode = #tpu.pipeline_mode<synchronous>, transform_indices = @transform_2, window_bounds = array<i64: 48, 96>}, {pipeline_mode = #tpu.pipeline_mode<synchronous>, transform_indices = @transform_3, window_bounds = array<i64: 1, 96>}, {pipeline_mode = #tpu.pipeline_mode<synchronous>, transform_indices = @transform_4, window_bounds = array<i64: 48, 48>}, {pipeline_mode = #tpu.pipeline_mode<synchronous>, transform_indices = @transform_5, window_bounds = array<i64: 1, 48>}, {pipeline_mode = #tpu.pipeline_mode<synchronous>, transform_indices = @transform_6, window_bounds = array<i64: 1, 48>}, {pipeline_mode = #tpu.pipeline_mode<synchronous>, transform_indices = @transform_7, window_bounds = array<i64: 1, 48>}, {pipeline_mode = #tpu.pipeline_mode<synchronous>, transform_indices = @transform_8, window_bounds = array<i64: 1, 48>}, {pipeline_mode = #tpu.pipeline_mode<synchronous>, transform_indices = @transform_9, window_bounds = array<i64: 1, 48>}, {pipeline_mode = #tpu.pipeline_mode<synchronous>, transform_indices = @transform_10, window_bounds = array<i64: 48, 10>}, {pipeline_mode = #tpu.pipeline_mode<synchronous>, transform_indices = @transform_11, window_bounds = array<i64: 1, 10>}, {transform_indices = @transform_12, window_bounds = array<i64: 1, 1, 10>}]} {
    %c0 = arith.constant 0 : index
    %c0_0 = arith.constant 0 : index
    %c0_1 = arith.constant 0 : index
    %0 = vector.load %arg1[%c0, %c0_0, %c0_1] : memref<1x16x48xf32, #tpu.memory_space<vmem>>, vector<1x16x48xf32>
    %c0_2 = arith.constant 0 : index
    %c0_3 = arith.constant 0 : index
    %c0_4 = arith.constant 0 : index
    %1 = vector.load %arg2[%c0_2, %c0_3, %c0_4] : memref<1x16x48xf32, #tpu.memory_space<vmem>>, vector<1x16x48xf32>
    %2 = vector.shape_cast %0 : vector<1x16x48xf32> to vector<16x48xf32>
    %3 = arith.truncf %2 : vector<16x48xf32> to vector<16x48xbf16>
    %4 = vector.shape_cast %1 : vector<1x16x48xf32> to vector<16x48xf32>
    %5 = arith.truncf %4 : vector<16x48xf32> to vector<16x48xbf16>
    %c0_5 = arith.constant 0 : index
    %c0_6 = arith.constant 0 : index
    %6 = vector.load %arg3[%c0_5, %c0_6] : memref<48x96xf32, #tpu.memory_space<vmem>>, vector<48x96xf32>
    %7 = arith.truncf %6 : vector<48x96xf32> to vector<48x96xbf16>
    %cst = arith.constant dense<0.000000e+00> : vector<16x96xf32>
    %8 = tpu.matmul %3, %7, %cst {dimension_numbers = #tpu.dot_dimension_numbers<[1], [0], [0], [1], [0, 0, 1, 1], [], []>} : vector<16x48xbf16>, vector<48x96xbf16>, vector<16x96xf32> -> vector<16x96xf32>
    %c0_7 = arith.constant 0 : index
    %c0_8 = arith.constant 0 : index
    %9 = vector.load %arg4[%c0_7, %c0_8] : memref<1x96xf32, #tpu.memory_space<vmem>>, vector<1x96xf32>
    %10 = vector.broadcast %9 : vector<1x96xf32> to vector<16x96xf32>
    %11 = arith.addf %8, %10 : vector<16x96xf32>
    %c0_9 = arith.constant 0 : index
    %c0_10 = arith.constant 0 : index
    %12 = vector.load %arg5[%c0_9, %c0_10] : memref<48x48xf32, #tpu.memory_space<vmem>>, vector<48x48xf32>
    %13 = arith.truncf %12 : vector<48x48xf32> to vector<48x48xbf16>
    %cst_11 = arith.constant dense<0.000000e+00> : vector<16x48xf32>
    %14 = tpu.matmul %5, %13, %cst_11 {dimension_numbers = #tpu.dot_dimension_numbers<[1], [0], [0], [1], [0, 0, 1, 1], [], []>} : vector<16x48xbf16>, vector<48x48xbf16>, vector<16x48xf32> -> vector<16x48xf32>
    %c0_12 = arith.constant 0 : index
    %c0_13 = arith.constant 0 : index
    %15 = vector.load %arg6[%c0_12, %c0_13] : memref<1x48xf32, #tpu.memory_space<vmem>>, vector<1x48xf32>
    %16 = vector.broadcast %15 : vector<1x48xf32> to vector<16x48xf32>
    %17 = arith.addf %14, %16 : vector<16x48xf32>
    %c0_14 = arith.constant 0 : index
    %c0_15 = arith.constant 0 : index
    %18 = vector.load %arg7[%c0_14, %c0_15] : memref<1x48xf32, #tpu.memory_space<vmem>>, vector<1x48xf32>
    %c0_16 = arith.constant 0 : index
    %c0_17 = arith.constant 0 : index
    %19 = vector.load %arg8[%c0_16, %c0_17] : memref<1x48xf32, #tpu.memory_space<vmem>>, vector<1x48xf32>
    %20 = vector.extract_strided_slice %11 {offsets = [0, 0], sizes = [16, 48], strides = [1, 1]} : vector<16x96xf32> to vector<16x48xf32>
    %cst_18 = arith.constant dense<0.000000e+00> : vector<16xf32>
    %21 = vector.multi_reduction <add>, %20, %cst_18 [1] : vector<16x48xf32> to vector<16xf32>
    %22 = vector.shape_cast %21 : vector<16xf32> to vector<16x1xf32>
    %cst_19 = arith.constant 4.800000e+01 : f32
    %23 = vector.broadcast %cst_19 : f32 to vector<16x1xf32>
    %24 = arith.divf %22, %23 : vector<16x1xf32>
    %25 = vector.broadcast %24 : vector<16x1xf32> to vector<16x48xf32>
    %26 = arith.subf %20, %25 : vector<16x48xf32>
    %27 = arith.mulf %26, %26 : vector<16x48xf32>
    %cst_20 = arith.constant dense<0.000000e+00> : vector<16xf32>
    %28 = vector.multi_reduction <add>, %27, %cst_20 [1] : vector<16x48xf32> to vector<16xf32>
    %29 = vector.shape_cast %28 : vector<16xf32> to vector<16x1xf32>
    %cst_21 = arith.constant 4.800000e+01 : f32
    %30 = vector.broadcast %cst_21 : f32 to vector<16x1xf32>
    %31 = arith.divf %29, %30 : vector<16x1xf32>
    %32 = vector.broadcast %24 : vector<16x1xf32> to vector<16x48xf32>
    %33 = arith.subf %20, %32 : vector<16x48xf32>
    %cst_22 = arith.constant 9.99999974E-6 : f32
    %34 = vector.broadcast %cst_22 : f32 to vector<16x1xf32>
    %35 = arith.addf %31, %34 : vector<16x1xf32>
    %36 = math.rsqrt %35 : vector<16x1xf32>
    %37 = vector.broadcast %36 : vector<16x1xf32> to vector<16x48xf32>
    %38 = arith.mulf %33, %37 : vector<16x48xf32>
    %39 = vector.broadcast %18 : vector<1x48xf32> to vector<16x48xf32>
    %40 = arith.mulf %38, %39 : vector<16x48xf32>
    %41 = vector.broadcast %19 : vector<1x48xf32> to vector<16x48xf32>
    %42 = arith.addf %40, %41 : vector<16x48xf32>
    %43 = vector.extract_strided_slice %11 {offsets = [0, 48], sizes = [16, 48], strides = [1, 1]} : vector<16x96xf32> to vector<16x48xf32>
    %cst_23 = arith.constant dense<0.000000e+00> : vector<16xf32>
    %44 = vector.multi_reduction <add>, %43, %cst_23 [1] : vector<16x48xf32> to vector<16xf32>
    %45 = vector.shape_cast %44 : vector<16xf32> to vector<16x1xf32>
    %cst_24 = arith.constant 4.800000e+01 : f32
    %46 = vector.broadcast %cst_24 : f32 to vector<16x1xf32>
    %47 = arith.divf %45, %46 : vector<16x1xf32>
    %48 = vector.broadcast %47 : vector<16x1xf32> to vector<16x48xf32>
    %49 = arith.subf %43, %48 : vector<16x48xf32>
    %50 = arith.mulf %49, %49 : vector<16x48xf32>
    %cst_25 = arith.constant dense<0.000000e+00> : vector<16xf32>
    %51 = vector.multi_reduction <add>, %50, %cst_25 [1] : vector<16x48xf32> to vector<16xf32>
    %52 = vector.shape_cast %51 : vector<16xf32> to vector<16x1xf32>
    %cst_26 = arith.constant 4.800000e+01 : f32
    %53 = vector.broadcast %cst_26 : f32 to vector<16x1xf32>
    %54 = arith.divf %52, %53 : vector<16x1xf32>
    %55 = vector.broadcast %47 : vector<16x1xf32> to vector<16x48xf32>
    %56 = arith.subf %43, %55 : vector<16x48xf32>
    %cst_27 = arith.constant 9.99999974E-6 : f32
    %57 = vector.broadcast %cst_27 : f32 to vector<16x1xf32>
    %58 = arith.addf %54, %57 : vector<16x1xf32>
    %59 = math.rsqrt %58 : vector<16x1xf32>
    %60 = vector.broadcast %59 : vector<16x1xf32> to vector<16x48xf32>
    %61 = arith.mulf %56, %60 : vector<16x48xf32>
    %62 = vector.broadcast %18 : vector<1x48xf32> to vector<16x48xf32>
    %63 = arith.mulf %61, %62 : vector<16x48xf32>
    %64 = vector.broadcast %19 : vector<1x48xf32> to vector<16x48xf32>
    %65 = arith.addf %63, %64 : vector<16x48xf32>
    %cst_28 = arith.constant dense<0.000000e+00> : vector<16xf32>
    %66 = vector.multi_reduction <add>, %17, %cst_28 [1] : vector<16x48xf32> to vector<16xf32>
    %67 = vector.shape_cast %66 : vector<16xf32> to vector<16x1xf32>
    %cst_29 = arith.constant 4.800000e+01 : f32
    %68 = vector.broadcast %cst_29 : f32 to vector<16x1xf32>
    %69 = arith.divf %67, %68 : vector<16x1xf32>
    %70 = vector.broadcast %69 : vector<16x1xf32> to vector<16x48xf32>
    %71 = arith.subf %17, %70 : vector<16x48xf32>
    %72 = arith.mulf %71, %71 : vector<16x48xf32>
    %cst_30 = arith.constant dense<0.000000e+00> : vector<16xf32>
    %73 = vector.multi_reduction <add>, %72, %cst_30 [1] : vector<16x48xf32> to vector<16xf32>
    %74 = vector.shape_cast %73 : vector<16xf32> to vector<16x1xf32>
    %cst_31 = arith.constant 4.800000e+01 : f32
    %75 = vector.broadcast %cst_31 : f32 to vector<16x1xf32>
    %76 = arith.divf %74, %75 : vector<16x1xf32>
    %77 = vector.broadcast %69 : vector<16x1xf32> to vector<16x48xf32>
    %78 = arith.subf %17, %77 : vector<16x48xf32>
    %cst_32 = arith.constant 9.99999974E-6 : f32
    %79 = vector.broadcast %cst_32 : f32 to vector<16x1xf32>
    %80 = arith.addf %76, %79 : vector<16x1xf32>
    %81 = math.rsqrt %80 : vector<16x1xf32>
    %82 = vector.broadcast %81 : vector<16x1xf32> to vector<16x48xf32>
    %83 = arith.mulf %78, %82 : vector<16x48xf32>
    %84 = vector.broadcast %18 : vector<1x48xf32> to vector<16x48xf32>
    %85 = arith.mulf %83, %84 : vector<16x48xf32>
    %86 = vector.broadcast %19 : vector<1x48xf32> to vector<16x48xf32>
    %87 = arith.addf %85, %86 : vector<16x48xf32>
    %cst_33 = arith.constant 0.144337565 : f32
    %88 = vector.broadcast %cst_33 : f32 to vector<16x48xf32>
    %89 = arith.mulf %42, %88 : vector<16x48xf32>
    %90 = arith.truncf %89 : vector<16x48xf32> to vector<16x48xbf16>
    %91 = vector.shape_cast %90 : vector<16x48xbf16> to vector<1x16x48xbf16>
    %92 = arith.truncf %87 : vector<16x48xf32> to vector<16x48xbf16>
    %93 = vector.shape_cast %92 : vector<16x48xbf16> to vector<1x16x48xbf16>
    %94 = arith.truncf %65 : vector<16x48xf32> to vector<16x48xbf16>
    %95 = vector.shape_cast %94 : vector<16x48xbf16> to vector<1x16x48xbf16>
    %96 = vector.extract_strided_slice %91 {offsets = [0, 0, 0], sizes = [1, 16, 8], strides = [1, 1, 1]} : vector<1x16x48xbf16> to vector<1x16x8xbf16>
    %97 = vector.extract_strided_slice %91 {offsets = [0, 0, 8], sizes = [1, 16, 8], strides = [1, 1, 1]} : vector<1x16x48xbf16> to vector<1x16x8xbf16>
    %98 = vector.extract_strided_slice %91 {offsets = [0, 0, 16], sizes = [1, 16, 8], strides = [1, 1, 1]} : vector<1x16x48xbf16> to vector<1x16x8xbf16>
    %99 = vector.extract_strided_slice %91 {offsets = [0, 0, 24], sizes = [1, 16, 8], strides = [1, 1, 1]} : vector<1x16x48xbf16> to vector<1x16x8xbf16>
    %100 = vector.extract_strided_slice %91 {offsets = [0, 0, 32], sizes = [1, 16, 8], strides = [1, 1, 1]} : vector<1x16x48xbf16> to vector<1x16x8xbf16>
    %101 = vector.extract_strided_slice %91 {offsets = [0, 0, 40], sizes = [1, 16, 8], strides = [1, 1, 1]} : vector<1x16x48xbf16> to vector<1x16x8xbf16>
    %102 = tpu.concatenate %96, %97, %98, %99, %100, %101 in 0 : vector<1x16x8xbf16>, vector<1x16x8xbf16>, vector<1x16x8xbf16>, vector<1x16x8xbf16>, vector<1x16x8xbf16>, vector<1x16x8xbf16> -> vector<6x16x8xbf16>
    %103 = vector.extract_strided_slice %93 {offsets = [0, 0, 0], sizes = [1, 16, 8], strides = [1, 1, 1]} : vector<1x16x48xbf16> to vector<1x16x8xbf16>
    %104 = vector.extract_strided_slice %93 {offsets = [0, 0, 8], sizes = [1, 16, 8], strides = [1, 1, 1]} : vector<1x16x48xbf16> to vector<1x16x8xbf16>
    %105 = vector.extract_strided_slice %93 {offsets = [0, 0, 16], sizes = [1, 16, 8], strides = [1, 1, 1]} : vector<1x16x48xbf16> to vector<1x16x8xbf16>
    %106 = vector.extract_strided_slice %93 {offsets = [0, 0, 24], sizes = [1, 16, 8], strides = [1, 1, 1]} : vector<1x16x48xbf16> to vector<1x16x8xbf16>
    %107 = vector.extract_strided_slice %93 {offsets = [0, 0, 32], sizes = [1, 16, 8], strides = [1, 1, 1]} : vector<1x16x48xbf16> to vector<1x16x8xbf16>
    %108 = vector.extract_strided_slice %93 {offsets = [0, 0, 40], sizes = [1, 16, 8], strides = [1, 1, 1]} : vector<1x16x48xbf16> to vector<1x16x8xbf16>
    %109 = tpu.concatenate %103, %104, %105, %106, %107, %108 in 0 : vector<1x16x8xbf16>, vector<1x16x8xbf16>, vector<1x16x8xbf16>, vector<1x16x8xbf16>, vector<1x16x8xbf16>, vector<1x16x8xbf16> -> vector<6x16x8xbf16>
    %110 = vector.extract_strided_slice %95 {offsets = [0, 0, 0], sizes = [1, 16, 8], strides = [1, 1, 1]} : vector<1x16x48xbf16> to vector<1x16x8xbf16>
    %111 = vector.extract_strided_slice %95 {offsets = [0, 0, 8], sizes = [1, 16, 8], strides = [1, 1, 1]} : vector<1x16x48xbf16> to vector<1x16x8xbf16>
    %112 = vector.extract_strided_slice %95 {offsets = [0, 0, 16], sizes = [1, 16, 8], strides = [1, 1, 1]} : vector<1x16x48xbf16> to vector<1x16x8xbf16>
    %113 = vector.extract_strided_slice %95 {offsets = [0, 0, 24], sizes = [1, 16, 8], strides = [1, 1, 1]} : vector<1x16x48xbf16> to vector<1x16x8xbf16>
    %114 = vector.extract_strided_slice %95 {offsets = [0, 0, 32], sizes = [1, 16, 8], strides = [1, 1, 1]} : vector<1x16x48xbf16> to vector<1x16x8xbf16>
    %115 = vector.extract_strided_slice %95 {offsets = [0, 0, 40], sizes = [1, 16, 8], strides = [1, 1, 1]} : vector<1x16x48xbf16> to vector<1x16x8xbf16>
    %116 = tpu.concatenate %110, %111, %112, %113, %114, %115 in 0 : vector<1x16x8xbf16>, vector<1x16x8xbf16>, vector<1x16x8xbf16>, vector<1x16x8xbf16>, vector<1x16x8xbf16>, vector<1x16x8xbf16> -> vector<6x16x8xbf16>
    "tpu.trace_start"() <{level = 10 : i32, message = "gnd,gmd->gnm"}> : () -> ()
    %cst_34 = arith.constant dense<0.000000e+00> : vector<6x16x16xf32>
    %117 = tpu.matmul %102, %109, %cst_34 {dimension_numbers = #tpu.dot_dimension_numbers<[2], [2], [1], [1], [0, 0, 0, 1, 1, 1], [0], [0]>} : vector<6x16x8xbf16>, vector<6x16x8xbf16>, vector<6x16x16xf32> -> vector<6x16x16xf32>
    "tpu.trace_stop"() : () -> ()
    %cst_35 = arith.constant dense<0xFF800000> : vector<6x16xf32>
    %118 = vector.multi_reduction <maximumf>, %117, %cst_35 [2] : vector<6x16x16xf32> to vector<6x16xf32>
    %119 = vector.shape_cast %118 : vector<6x16xf32> to vector<6x16x1xf32>
    %120 = vector.broadcast %119 : vector<6x16x1xf32> to vector<6x16x16xf32>
    %121 = arith.subf %117, %120 : vector<6x16x16xf32>
    %122 = math.exp %121 : vector<6x16x16xf32>
    %cst_36 = arith.constant dense<0.000000e+00> : vector<6x16xf32>
    %123 = vector.multi_reduction <add>, %122, %cst_36 [2] : vector<6x16x16xf32> to vector<6x16xf32>
    %124 = vector.shape_cast %123 : vector<6x16xf32> to vector<6x16x1xf32>
    %125 = vector.broadcast %124 : vector<6x16x1xf32> to vector<6x16x16xf32>
    %126 = arith.divf %122, %125 : vector<6x16x16xf32>
    %127 = arith.truncf %126 : vector<6x16x16xf32> to vector<6x16x16xbf16>
    "tpu.trace_start"() <{level = 10 : i32, message = "gnm,gmd->gnd"}> : () -> ()
    %cst_37 = arith.constant dense<0.000000e+00> : vector<6x16x8xf32>
    %128 = tpu.matmul %127, %116, %cst_37 {dimension_numbers = #tpu.dot_dimension_numbers<[2], [1], [1], [2], [0, 0, 0, 1, 1, 2], [0], [0]>} : vector<6x16x16xbf16>, vector<6x16x8xbf16>, vector<6x16x8xf32> -> vector<6x16x8xf32>
    "tpu.trace_stop"() : () -> ()
    %129 = vector.extract_strided_slice %128 {offsets = [0, 0, 0], sizes = [1, 16, 8], strides = [1, 1, 1]} : vector<6x16x8xf32> to vector<1x16x8xf32>
    %130 = vector.extract_strided_slice %128 {offsets = [1, 0, 0], sizes = [1, 16, 8], strides = [1, 1, 1]} : vector<6x16x8xf32> to vector<1x16x8xf32>
    %131 = vector.extract_strided_slice %128 {offsets = [2, 0, 0], sizes = [1, 16, 8], strides = [1, 1, 1]} : vector<6x16x8xf32> to vector<1x16x8xf32>
    %132 = vector.extract_strided_slice %128 {offsets = [3, 0, 0], sizes = [1, 16, 8], strides = [1, 1, 1]} : vector<6x16x8xf32> to vector<1x16x8xf32>
    %133 = vector.extract_strided_slice %128 {offsets = [4, 0, 0], sizes = [1, 16, 8], strides = [1, 1, 1]} : vector<6x16x8xf32> to vector<1x16x8xf32>
    %134 = vector.extract_strided_slice %128 {offsets = [5, 0, 0], sizes = [1, 16, 8], strides = [1, 1, 1]} : vector<6x16x8xf32> to vector<1x16x8xf32>
    %135 = tpu.concatenate %129, %130, %131, %132, %133, %134 in 2 : vector<1x16x8xf32>, vector<1x16x8xf32>, vector<1x16x8xf32>, vector<1x16x8xf32>, vector<1x16x8xf32>, vector<1x16x8xf32> -> vector<1x16x48xf32>
    %136 = arith.addf %135, %0 : vector<1x16x48xf32>
    %c0_38 = arith.constant 0 : index
    %c0_39 = arith.constant 0 : index
    %137 = vector.load %arg9[%c0_38, %c0_39] : memref<1x48xf32, #tpu.memory_space<vmem>>, vector<1x48xf32>
    %c0_40 = arith.constant 0 : index
    %c0_41 = arith.constant 0 : index
    %138 = vector.load %arg10[%c0_40, %c0_41] : memref<1x48xf32, #tpu.memory_space<vmem>>, vector<1x48xf32>
    %cst_42 = arith.constant dense<0.000000e+00> : vector<1x16xf32>
    %139 = vector.multi_reduction <add>, %136, %cst_42 [2] : vector<1x16x48xf32> to vector<1x16xf32>
    %140 = vector.shape_cast %139 : vector<1x16xf32> to vector<1x16x1xf32>
    %cst_43 = arith.constant 4.800000e+01 : f32
    %141 = vector.broadcast %cst_43 : f32 to vector<1x16x1xf32>
    %142 = arith.divf %140, %141 : vector<1x16x1xf32>
    %143 = vector.broadcast %142 : vector<1x16x1xf32> to vector<1x16x48xf32>
    %144 = arith.subf %136, %143 : vector<1x16x48xf32>
    %145 = arith.mulf %144, %144 : vector<1x16x48xf32>
    %cst_44 = arith.constant dense<0.000000e+00> : vector<1x16xf32>
    %146 = vector.multi_reduction <add>, %145, %cst_44 [2] : vector<1x16x48xf32> to vector<1x16xf32>
    %147 = vector.shape_cast %146 : vector<1x16xf32> to vector<1x16x1xf32>
    %cst_45 = arith.constant 4.800000e+01 : f32
    %148 = vector.broadcast %cst_45 : f32 to vector<1x16x1xf32>
    %149 = arith.divf %147, %148 : vector<1x16x1xf32>
    %150 = vector.broadcast %142 : vector<1x16x1xf32> to vector<1x16x48xf32>
    %151 = arith.subf %136, %150 : vector<1x16x48xf32>
    %cst_46 = arith.constant 9.99999974E-6 : f32
    %152 = vector.broadcast %cst_46 : f32 to vector<1x16x1xf32>
    %153 = arith.addf %149, %152 : vector<1x16x1xf32>
    %154 = math.rsqrt %153 : vector<1x16x1xf32>
    %155 = vector.broadcast %154 : vector<1x16x1xf32> to vector<1x16x48xf32>
    %156 = arith.mulf %151, %155 : vector<1x16x48xf32>
    %157 = vector.shape_cast %137 : vector<1x48xf32> to vector<1x1x48xf32>
    %158 = vector.broadcast %157 : vector<1x1x48xf32> to vector<1x16x48xf32>
    %159 = arith.mulf %156, %158 : vector<1x16x48xf32>
    %160 = vector.shape_cast %138 : vector<1x48xf32> to vector<1x1x48xf32>
    %161 = vector.broadcast %160 : vector<1x1x48xf32> to vector<1x16x48xf32>
    %162 = arith.addf %159, %161 : vector<1x16x48xf32>
    %cst_47 = arith.constant dense<0.000000e+00> : vector<1x48xf32>
    %163 = vector.multi_reduction <add>, %162, %cst_47 [1] : vector<1x16x48xf32> to vector<1x48xf32>
    %cst_48 = arith.constant 1.600000e+01 : f32
    %164 = vector.broadcast %cst_48 : f32 to vector<1x48xf32>
    %165 = arith.divf %163, %164 : vector<1x48xf32>
    %c0_49 = arith.constant 0 : index
    %c0_50 = arith.constant 0 : index
    %166 = vector.load %arg11[%c0_49, %c0_50] : memref<48x10xf32, #tpu.memory_space<vmem>>, vector<48x10xf32>
    %cst_51 = arith.constant dense<0.000000e+00> : vector<1x10xf32>
    %167 = tpu.matmul %165, %166, %cst_51 {dimension_numbers = #tpu.dot_dimension_numbers<[1], [0], [0], [1], [0, 0, 1, 1], [], []>} : vector<1x48xf32>, vector<48x10xf32>, vector<1x10xf32> -> vector<1x10xf32>
    %c0_52 = arith.constant 0 : index
    %c0_53 = arith.constant 0 : index
    %168 = vector.load %arg12[%c0_52, %c0_53] : memref<1x10xf32, #tpu.memory_space<vmem>>, vector<1x10xf32>
    %169 = arith.addf %167, %168 : vector<1x10xf32>
    %170 = vector.shape_cast %169 : vector<1x10xf32> to vector<1x1x10xf32>
    %c0_54 = arith.constant 0 : index
    %c0_55 = arith.constant 0 : index
    %c0_56 = arith.constant 0 : index
    %171 = vector.load %arg13[%c0_54, %c0_55, %c0_56] : memref<1x1x10xf32, #tpu.memory_space<vmem>>, vector<1x1x10xf32>
    tpu.vector_store %arg13[%c0_54, %c0_55, %c0_56], %170 {strides = array<i32>} : memref<1x1x10xf32, #tpu.memory_space<vmem>>, vector<1x1x10xf32>,
    return
  }
  func.func @transform_0(%arg0: i32) -> (i32, i32, i32) {
    %c0_i32 = arith.constant 0 : i32
    %c0_i32_0 = arith.constant 0 : i32
    %c0_i32_1 = arith.constant 0 : i32
    return %arg0, %c0_i32, %c0_i32_0 : i32, i32, i32
  }
  func.func @transform_1(%arg0: i32) -> (i32, i32, i32) {
    %c0_i32 = arith.constant 0 : i32
    %c0_i32_0 = arith.constant 0 : i32
    %c0_i32_1 = arith.constant 0 : i32
    return %arg0, %c0_i32, %c0_i32_0 : i32, i32, i32
  }
  func.func @transform_2(%arg0: i32) -> (i32, i32) {
    %c0_i32 = arith.constant 0 : i32
    %c0_i32_0 = arith.constant 0 : i32
    %c0_i32_1 = arith.constant 0 : i32
    return %c0_i32, %c0_i32_0 : i32, i32
  }
  func.func @transform_3(%arg0: i32) -> (i32, i32) {
    %c0_i32 = arith.constant 0 : i32
    %c0_i32_0 = arith.constant 0 : i32
    %c0_i32_1 = arith.constant 0 : i32
    return %c0_i32, %c0_i32_0 : i32, i32
  }
  func.func @transform_4(%arg0: i32) -> (i32, i32) {
    %c0_i32 = arith.constant 0 : i32
    %c0_i32_0 = arith.constant 0 : i32
    %c0_i32_1 = arith.constant 0 : i32
    return %c0_i32, %c0_i32_0 : i32, i32
  }
  func.func @transform_5(%arg0: i32) -> (i32, i32) {
    %c0_i32 = arith.constant 0 : i32
    %c0_i32_0 = arith.constant 0 : i32
    %c0_i32_1 = arith.constant 0 : i32
    return %c0_i32, %c0_i32_0 : i32, i32
  }
  func.func @transform_6(%arg0: i32) -> (i32, i32) {
    %c0_i32 = arith.constant 0 : i32
    %c0_i32_0 = arith.constant 0 : i32
    %c0_i32_1 = arith.constant 0 : i32
    return %c0_i32, %c0_i32_0 : i32, i32
  }
  func.func @transform_7(%arg0: i32) -> (i32, i32) {
    %c0_i32 = arith.constant 0 : i32
    %c0_i32_0 = arith.constant 0 : i32
    %c0_i32_1 = arith.constant 0 : i32
    return %c0_i32, %c0_i32_0 : i32, i32
  }
  func.func @transform_8(%arg0: i32) -> (i32, i32) {
    %c0_i32 = arith.constant 0 : i32
    %c0_i32_0 = arith.constant 0 : i32
    %c0_i32_1 = arith.constant 0 : i32
    return %c0_i32, %c0_i32_0 : i32, i32
  }
  func.func @transform_9(%arg0: i32) -> (i32, i32) {
    %c0_i32 = arith.constant 0 : i32
    %c0_i32_0 = arith.constant 0 : i32
    %c0_i32_1 = arith.constant 0 : i32
    return %c0_i32, %c0_i32_0 : i32, i32
  }
  func.func @transform_10(%arg0: i32) -> (i32, i32) {
    %c0_i32 = arith.constant 0 : i32
    %c0_i32_0 = arith.constant 0 : i32
    %c0_i32_1 = arith.constant 0 : i32
    return %c0_i32, %c0_i32_0 : i32, i32
  }
  func.func @transform_11(%arg0: i32) -> (i32, i32) {
    %c0_i32 = arith.constant 0 : i32
    %c0_i32_0 = arith.constant 0 : i32
    %c0_i32_1 = arith.constant 0 : i32
    return %c0_i32, %c0_i32_0 : i32, i32
  }
  func.func @transform_12(%arg0: i32) -> (i32, i32, i32) {
    %c0_i32 = arith.constant 0 : i32
    %c0_i32_0 = arith.constant 0 : i32
    %c0_i32_1 = arith.constant 0 : i32
    return %arg0, %c0_i32, %c0_i32_0 : i32, i32, i32
  }
}

</mosaic_0001>

<bundles_post_ra>
// kernel: tpu_custom_call.1
= control target key start
LH: loop header
LB: loop body
LE: loop exit
PB: predicated region body
PF: predicated region fallthrough
CT: control target
= control target key end

     0   :  { %s2843_s0 = inlined_call_operand.hbm [shape: f32[2,16,48], index: 0, kind: input, shape index: {}]   ;;  %s2844_s1 = inlined_call_operand.hbm [shape: f32[2,16,48], index: 1, kind: input, shape index: {}]   ;;  %s2845_s2 = inlined_call_operand.vmem [shape: f32[48,96], index: 2, kind: input, shape index: {}]   ;;  %s2846_s3 = inlined_call_operand.vmem [shape: f32[1,96], index: 3, kind: input, shape index: {}]   ;;  %s2847_s4 = inlined_call_operand.hbm [shape: f32[48,48], index: 4, kind: input, shape index: {}]   ;;  %s2848_s5 = inlined_call_operand.vmem [shape: f32[1,48], index: 5, kind: input, shape index: {}]   ;;  %s2849_s6 = inlined_call_operand.vmem [shape: f32[1,48], index: 6, kind: input, shape index: {}]   ;;  %s2850_s7 = inlined_call_operand.vmem [shape: f32[1,48], index: 7, kind: input, shape index: {}]   ;;  %s2851_s8 = inlined_call_operand.vmem [shape: f32[1,48], index: 8, kind: input, shape index: {}]   ;;  %s2852_s9 = inlined_call_operand.vmem [shape: f32[1,48], index: 9, kind: input, shape index: {}]   ;;  %s2853_s10 = inlined_call_operand.vmem [shape: f32[48,10], index: 10, kind: input, shape index: {}]   ;;  %s2854_s11 = inlined_call_operand.vmem [shape: f32[1,10], index: 11, kind: input, shape index: {}]   ;;  %s2855_s12 = inlined_call_operand.hbm [shape: f32[2,1,10], index: 12, kind: output, shape index: {}]  }
   0x1   :  { %2868 = sst [smem:[#allocation19_spill]] %s2843_s0 }
   0x2   :  { %2869 = sst [smem:[#allocation20_spill]] %s2847_s4 }
   0x3   :  { %2870 = sst [smem:[#allocation21_spill]] %s2854_s11 }
   0x4   :  { %2871 = sst [smem:[#allocation22_spill]] %s2855_s12 }
   0x5   :  { %17 = vsyncpa [#allocation3], 0 }
   0x6   :  { %19 = vsyncpa [#allocation3 + $0x1], 0 }
   0x7   :  { %20 = vsyncpa [#allocation6], 0 }
   0x8   :  { %22 = vsyncpa [#allocation6 + $0x1], 0 }
   0x9   :  { %23 = vsyncpa [#allocation4], 0 }
   0xa   :  { %25 = vsyncpa [#allocation4 + $0x1], 0  ;;  %s2146_s21 = smov 0   ;;  %s2148_s22 = smov 0  }
   0xb   :  { %s2150_s23 = smov 0   ;;  %s2152_s24 = smov 0  }
   0xc LB: > { %2872 = sst [smem:[#allocation13_spill]] %s2050_s21  ;;  %s2167_s25 = sadd.s32 4294967295, %s2062_s24   ;;  %s2062_s24 = sphi %s2152_s24, %s2911_s24   ;;  %s2058_s23 = sphi %s2150_s23, %s2913_s23   ;;  %s2054_s22 = sphi %s2148_s22, %s2915_s22   ;;  %s2050_s21 = sphi %s2146_s21, %s2914_s21  }
   0xd   : > { %2873 = sst [smem:[#allocation14_spill]] %s2058_s23  ;;  %s1711_s26 = sadd.s32 4294967294, %s2062_s24  }
   0xe   : > { %p51_p0 = scmp.ne.s32.totalorder %s2054_s22, %s2050_s21  ;;  %p52_p1 = scmp.eq.s32.totalorder %s2167_s25, 0 }
   0xf   : > { %p311_p2 = scmp.eq.s32.totalorder %s2167_s25, 1  ;;  %p317_p3 = scmp.eq.s32.totalorder %s1711_s26, 1 }
  0x10   : > { %p2176_p4 = por %p52_p1, %p51_p0  ;;  %p1712_p5 = scmp.ge.s32.totalorder %s2062_s24, 1 }
  0x11   : > { %p2181_p6 = por %p317_p3, %p51_p0  ;;  %p324_p7 = scmp.lt.s32.totalorder %s2062_s24, 3 }
  0x12   : > { %s2877_s4 = sld [smem:[#allocation20_spill]]  ;;  %s2064_s15 = smov [#allocation7]  }
  0x13   : > { %s2875_s28 = scalar_select %p2181_p6, 1, 0 }
  0x14   : > { %p2189_p8 = pnand %p1712_p5, %p324_p7  ;;  %s343_s16 = sshll.u32 %s2064_s15, 4  ;;  %s344_s16 = int_to_ptr.vmem [resolvable:$true] %s343_s16 }
  0x15   : > { %2876 = sst [smem:[#allocation15_spill]] %s2875_s28  ;;  %s2199_s17 = sadd.s32 1, %s2062_s24  }
  0x16   : > { %p1754_p9 = pneg %p2189_p8  ;;  %2879 = sst [smem:[#allocation16_spill]] %s2199_s17 }
  0x17   : > { %s2858_s18 = smov 128   ;;  %s2860_s19 = smov 8  }
  0x18   : > { %s341_s13 = sshll.u32 %s2877_s4, 4  ;;  %p1755_p10 = pnand %p1754_p9, %p52_p1  ;;  %s342_s13 = int_to_ptr.hbm [resolvable:$true] %s341_s13 }
  0x19   : > { %s35_s20 = ssub.s32 %s2062_s24, %s2199_s17  ;;  %s38_s26 = sadd.s32 1, %s2058_s23 }
  0x1a   : > { %1757 = dma.hbm_to_vmem [thread:$0]  (!%p1755_p10), %s342_s13, 768, %s344_s16, [#allocation6], %s2858_s18, %s2858_s18, %s2860_s19  }
  0x1b   : > { %p36_p12 = scmp.eq.s32.totalorder %s35_s20, 0  ;;  %p45_p13 = scmp.ne.s32.totalorder %s2058_s23, %s2054_s22 }
  0x1c   : > { %p46_p0 = scmp.eq.s32.totalorder %s2062_s24, 0  ;;  %p1770_p3 = scmp.lt.s32.totalorder %s2062_s24, 2 }
  0x1d   : > { %s2212_s29 = scalar_select %p36_p12, %s2058_s23, %s38_s26  }
  0x1e   : > { %p47_p5 = por %p46_p0, %p45_p13  ;;  %p2216_p7 = por %p311_p2, %p45_p13 }
  0x1f   : > { %2880 = sst [smem:[#allocation17_spill]] %s2212_s29  ;;  %s378_s15 = sand.u32 1, %s2058_s23  }
  0x20   : > { %s2881_s30 = scalar_select %p2216_p7, 1, 0 }
  0x21   : > { %s1742_s4 = sshll.u32 %s2062_s24, 4  ;;  %s1715_s28 = sshll.u32 %s378_s15, 4 }
  0x22   : > { %2882 = sst [smem:[#allocation18_spill]] %s2881_s30  ;;  %s382_s18 = scalar_lea.vmem [#allocation2], %s1715_s28 }
  0x23   : > { %s2883_s0 = sld [smem:[#allocation19_spill]]  ;;  %s390_s19 = sshll.u32 %s382_s18, 4  ;;  %s391_s19 = int_to_ptr.vmem [resolvable:$true] %s390_s19 }
  0x24   : > { %p2227_p9 = pnand %p1770_p3, %p47_p5  ;;  %s409_s23 = scalar_lea.hbm %s2844_s1, %s1742_s4 }
  0x25   : > { %s404_s30 = scalar_lea.vmem [#allocation5], %s1715_s28  ;;  %s410_s21 = sshll.u32 %s409_s23, 4  ;;  %s411_s21 = int_to_ptr.hbm [resolvable:$true] %s410_s21 }
  0x26   : > { %s2234_s11 = sshll.u32 %s404_s30, 4  ;;  %s379_s13 = scalar_lea.sflag [#allocation3], %s378_s15  ;;  %s413_s11 = int_to_ptr.vmem [resolvable:$true] %s2234_s11 }
  0x27   : > { %p1932_p10 = pneg %p2227_p9 }
  0x29   : > { %s387_s16 = scalar_lea.hbm %s2883_s0, %s1742_s4  ;;  %s1935_s29 = scalar_lea.hbm %s2883_s0, 32 }
  0x2a   : > { %s388_s20 = sshll.u32 %s387_s16, 4  ;;  %s389_s20 = int_to_ptr.hbm [resolvable:$true] %s388_s20 }
  0x2b   : > { %s1928_s16 = sshra.s32 %s389_s20, 4  ;;  %s1929_s16 = int_to_ptr.hbm [resolvable:$true] %s1928_s16 }
  0x2c   : > { %s1930_s18 = scalar_lea.hbm %s1929_s16, 16  ;;  %p1936_p0 = scmp.lt.s32.totalorder %s1929_s16, %s2883_s0 }
  0x2d   : > { %p1931_p2 = scmp.ne.s32.totalorder %s1929_s16, %s1930_s18  ;;  %p1937_p3 = scmp.lt.s32.totalorder %s1935_s29, %s1930_s18 }
  0x2f   : > { %p1933_p12 = pnand %p1932_p10, %p1931_p2  ;;  %p1938_p5 = por %p1937_p3, %p1936_p0 }
  0x31   : > { %p1934_p13 = pneg %p1933_p12 }
  0x33   : > { %p1939_p11 = pnand %p1938_p5, %p1934_p13 }
  0x35   : > { %1942 = shalt.err (!%p1939_p11)
}
  0x36   : > { %s2885_s23 = smov 8   ;;  %s2886_s30 = smov 128  }
  0x37   : > { %1761 = dma.hbm_to_vmem [thread:$0]  (!%p2227_p9), %s389_s20, 256, %s391_s19, %s379_s13, %s2886_s30, %s2886_s30, %s2885_s23  }
  0x38   : > { %s400_s12 = sand.u32 1, %s2062_s24   ;;  %s1958_s17 = sshra.s32 %s411_s21, 4  ;;  %s1959_s17 = int_to_ptr.hbm [resolvable:$true] %s1958_s17 }
  0x39   : > { %s401_s15 = scalar_lea.sflag [#allocation6], %s400_s12  ;;  %s1960_s16 = scalar_lea.hbm %s1959_s17, 16 }
  0x3a   : > { %p1961_p2 = scmp.ne.s32.totalorder %s1959_s17, %s1960_s16  ;;  %s1965_s4 = scalar_lea.hbm %s2844_s1, 32 }
  0x3b   : > { %p1966_p13 = scmp.lt.s32.totalorder %s1959_s17, %s2844_s1  ;;  %p1967_p0 = scmp.lt.s32.totalorder %s1965_s4, %s1960_s16 }
  0x3c   : > { %p1963_p11 = pnand %p1961_p2, %p1932_p10 }
  0x3d   : > { %p1968_p3 = por %p1967_p0, %p1966_p13 }
  0x3e   : > { %p1964_p12 = pneg %p1963_p11 }
  0x40   : > { %p1969_p5 = pnand %p1968_p3, %p1964_p12 }
  0x42   : > { %1972 = shalt.err (!%p1969_p5)
}
  0x43   : > { %1764 = dma.hbm_to_vmem [thread:$0]  (!%p2227_p9), %s411_s21, 256, %s413_s11, %s401_s15, %s2886_s30, %s2886_s30, %s2885_s23  }
  0x44   : > { %424 = sbr.rel (%p2189_p8) target bundleno = 2033 (0x7f1), region = 68  ;;  %s2271_s19 = sand.u32 (!%p2189_p8), 1, %s2054_s22  }
  0x45   : > { %s1722_s0 = sshll.u32 (!%p2189_p8), %s2271_s19, 4  ;;  %s427_s20 = scalar_lea.sflag (!%p2189_p8), [#allocation3], %s2271_s19 }
  0x46   : > { %s2275_s13 = scalar_lea.vmem (!%p2189_p8), [#allocation2], %s1722_s0 }
  0x49   : > { %2033 = dma.done.wait (%p2176_p4), %s427_s20, 256  }
  0x4a   : > { %2035 = vsyncadd (%p2176_p4), %s427_s20, 4294967040  ;;  %s436_s11 = sand.u32 1, %s2167_s25   ;;  %s440_s26 = scalar_lea.vmem [#allocation5], %s1722_s0 }
  0x4b   : > { %s437_s14 = scalar_lea.sflag [#allocation6], %s436_s11 }
  0x4c   : > { %2037 = dma.done.wait (%p2176_p4), %s437_s14, 256  }
  0x4d   : > { %2039 = vsyncadd (%p2176_p4), %s437_s14, 4294967040 }
  0x4e   : > { %2041 = dma.done.wait (%p52_p1), [#allocation6], 768  }
  0x4f   : > { %2043 = vsyncadd (%p52_p1), [#allocation6], 4294966528  ;;  %v502_v0 = vld [vmem:[%s2845_s2 + $0x20] sm:$0xff]  ;;  %v503_v1 = vld [vmem:[%s2845_s2 + $0x28] sm:$0xff]  ;;  %vm511_vm0 = vcmask 392192   ;;  %v2068_v38 = vmov 48.0  }
  0x50   : > { %v533_v2 = vld [vmem:[#allocation7 + $0x20] sm:$0xff]  ;;  %v506_v3 = vpack.c.bf16 %v503_v1, %v502_v0  ;;  %v534_v4 = vld [vmem:[#allocation7 + $0x28] sm:$0xff]  ;;  %v500_v5 = vld [vmem:[%s2845_s2 + $0x10] sm:$0xff]  ;;  %1828 = vrcp.f32 %v2068_v38  ;;  %s2069_s27 = smov 120   ;;  %s2070_s15 = smov 112   ;;  %vm820_vm14 = vcmask 64512  }
  0x51   : > { %v501_v6 = vld [vmem:[%s2845_s2 + $0x18] sm:$0xff]  ;;  %v537_v7 = vpack.c.bf16 %v534_v4, %v533_v2  ;;  %v531_v8 = vld [vmem:[#allocation7 + $0x10] sm:$0xff]  ;;  %v498_v12 = vld [vmem:[%s2845_s2] sm:$0xff]  ;;  %s2071_s17 = smov 104   ;;  %s2072_s16 = smov 96   ;;  %vm971_vm15 = vcmask 130048  }
  0x52   : > { %v532_v9 = vld [vmem:[#allocation7 + $0x18] sm:$0xff]  ;;  %520 = vmatpush.bf16.msra.mxu0 %v506_v3  ;;  %v505_v10 = vpack.c.bf16 %v501_v6, %v500_v5  ;;  %v499_v13 = vld [vmem:[%s2845_s2 + $0x8] sm:$0xff]  ;;  %v529_v14 = vld [vmem:[#allocation7] sm:$0xff]  ;;  %s2073_s18 = smov 88   ;;  %s2074_s29 = smov 48  }
  0x53   : > { %550 = vmatpush.bf16.msra.mxu1 %v537_v7  ;;  %v536_v11 = vpack.c.bf16 %v532_v9, %v531_v8  ;;  %v530_v15 = vld [vmem:[#allocation7 + $0x8] sm:$0xff]  ;;  %v492_v16 = vld [vmem:[%s2275_s13] sm:$0xff]  ;;  %v504_v17 = vpack.c.bf16 %v499_v13, %v498_v12  ;;  %s2075_s4 = smov 32   ;;  %s2076_s28 = smov 8  }
  0x54   : > { %v493_v18 = vld [vmem:[%s2275_s13 + $0x8] sm:$0xff]  ;;  %v535_v19 = vpack.c.bf16 %v530_v15, %v529_v14  ;;  %v494_v20 = vld [vmem:[%s440_s26] sm:$0xff]  ;;  %s2077_s0 = smov 16   ;;  %s2078_s20 = smov 24  }
  0x55   : > { %v495_v21 = vld [vmem:[%s440_s26 + $0x8] sm:$0xff]  ;;  %v496_v22 = vpack.c.bf16 %v493_v18, %v492_v16  ;;  %v1822_v24 = vld [vmem:[%s2846_s3] ss:$0 sm:$0xff]  ;;  %s2067_s26 = smov 80   ;;  %s2079_s11 = smov 40  }
  0x56   : > { %521 = vmatpush.bf16.msra.mxu0 %v505_v10  ;;  %v497_v23 = vpack.c.bf16 %v495_v21, %v494_v20  ;;  %v1823_v25 = vld [vmem:[%s2848_s5] ss:$0 sm:$0xff]  ;;  %v1829_v39 = vpop.eup %1828  ;;  %s2906_s23 = sld [smem:[#allocation21_spill]]  ;;  %s490_s12 = scalar_lea.vmem [#allocation8], %s2271_s19 }
  0x57   : > { %551 = vmatpush.bf16.msra.mxu1 %v536_v11  ;;  %v568_v40 = vmul.f32 48.0, %v1829_v39  ;;  %vm572_vm1 = vweird.f32 %v1829_v39 }
  0x59   : > { %v569_v41 = vsub.f32 1.0, %v568_v40 }
  0x5a   : > { %522 = vmatpush.bf16.msra.mxu0 %v504_v17 }
  0x5b   : > { %552 = vmatpush.bf16.msra.mxu1 %v535_v19  ;;  %v570_v42 = vmul.f32 %v1829_v39, %v569_v41 }
  0x5d   : > { %1725 = vmatmul.msk.bf16.vlgmr.msra.gmra.mxu0 %vm511_vm0, %v496_v22  ;;  %v571_v43 = vadd.f32 %v1829_v39, %v570_v42 }
  0x5e   : > { %1726 = vmatmul.msk.bf16.vlgmr.msra.gmra.mxu1 %vm511_vm0, %v497_v23 }
  0x5f   : > { %v2332_v44 = vsel %vm572_vm1, %v1829_v39, %v571_v43  ;;  %v2377_v39 = vld [vmem:[%s2850_s7] ss:$0 sm:$0xff] }
  0xda   : > { %v524_v26 = vpop.f32.mrf.mxu0 }
  0xdb   : > { %v2318_v27 = vadd.f32 %v1822_v24, %v524_v26  ;;  %v554_v28 = vpop.f32.mrf.mxu1 }
  0xdc   : > { %v555_v29 = vadd.f32 %v1823_v25, %v554_v28 }
  0xdd   : > { %v561_v30 = vsel %vm511_vm0, %v2318_v27, 0.0  ;;  %624 = vrot.lane.b32.xlu2 %v2318_v27, %s2067_s26 }
  0xde   : > { %v692_v31 = vsel %vm511_vm0, %v555_v29, 0.0  ;;  %562 = vadd.xlane.f32.xlu1 %v561_v30 }
  0xdf   : > { %693 = vadd.xlane.f32.xlu0 %v692_v31 }
  0xe2   : > { %v526_v32 = vpop.f32.mrf.mxu0 }
  0xe3   : > { %v2325_v33 = vadd.f32 %v1822_v24, %v526_v32  ;;  %v556_v34 = vpop.f32.mrf.mxu1  ;;  %v2371_v32 = vld [vmem:[%s2849_s6] ss:$0 sm:$0xff] }
  0xe4   : > { %v557_v35 = vadd.f32 %v1823_v25, %v556_v34 }
  0xe5   : > { %v564_v36 = vsel %vm511_vm0, %v2325_v33, 0.0 }
  0xe6   : > { %v695_v37 = vsel %vm511_vm0, %v557_v35, 0.0  ;;  %565 = vadd.xlane.f32.xlu1 %v564_v36 }
  0xe7   : > { %696 = vadd.xlane.f32.xlu0 %v695_v37 }
  0xff   : > { %626 = vrot.lane.b32.xlu1 %v2325_v33, %s2067_s26 }
 0x137   : > { %v2360_v1 = vpop.permute.xlu2 %624 }
 0x151   : > { %v563_v45 = vpop.xlane.xlu1 %562 }
 0x152   : > { %v694_v46 = vpop.xlane.xlu0 %693  ;;  %v574_v47 = vmul.f32 %v2332_v44, %v563_v45 }
 0x153   : > { %v698_v48 = vmul.f32 %v694_v46, %v2332_v44 }
 0x154   : > { %v2337_v49 = vsub.f32 %v2318_v27, %v574_v47 }
 0x155   : > { %v2339_v50 = vsub.f32 %v555_v29, %v698_v48 }
 0x156   : > { %v578_v51 = vmul.f32 %v2337_v49, %v2337_v49 }
 0x157   : > { %v702_v52 = vmul.f32 %v2339_v50, %v2339_v50 }
 0x158   : > { %v580_v53 = vsel %vm511_vm0, %v578_v51, 0.0 }
 0x159   : > { %v704_v54 = vsel %vm511_vm0, %v702_v52, 0.0  ;;  %581 = vadd.xlane.f32.xlu0 %v580_v53  ;;  %v566_v55 = vpop.xlane.xlu1 %565 }
 0x15a   : > { %v697_v56 = vpop.xlane.xlu0 %696  ;;  %705 = vadd.xlane.f32.xlu2 %v704_v54  ;;  %v575_v57 = vmul.f32 %v2332_v44, %v566_v55 }
 0x15b   : > { %v699_v58 = vmul.f32 %v697_v56, %v2332_v44 }
 0x15c   : > { %v2350_v59 = vsub.f32 %v2325_v33, %v575_v57 }
 0x15d   : > { %v2352_v60 = vsub.f32 %v557_v35, %v699_v58 }
 0x15e   : > { %v579_v61 = vmul.f32 %v2350_v59, %v2350_v59 }
 0x15f   : > { %v703_v62 = vmul.f32 %v2352_v60, %v2352_v60 }
 0x160   : > { %v583_v63 = vsel %vm511_vm0, %v579_v61, 0.0 }
 0x161   : > { %v707_v0 = vsel %vm511_vm0, %v703_v62, 0.0  ;;  %584 = vadd.xlane.f32.xlu1 %v583_v63 }
 0x162   : > { %708 = vadd.xlane.f32.xlu2 %v707_v0 }
 0x171   : > { %v2362_v2 = vpop.permute.xlu1 %626 }
 0x1cc   : > { %v582_v3 = vpop.xlane.xlu0 %581 }
 0x1cd   : > { %v706_v4 = vpop.xlane.xlu2 %705  ;;  %v586_v5 = vmul.f32 %v582_v3, %v2332_v44 }
 0x1ce   : > { %v710_v6 = vmul.f32 %v706_v4, %v2332_v44 }
 0x1cf   : > { %v588_v7 = vadd.f32 1e-05, %v586_v5 }
 0x1d0   : > { %v712_v8 = vadd.f32 1e-05, %v710_v6 }
 0x1d1   : > { %1830 = vrsqrt.f32 %v588_v7  ;;  %vm596_vm4 = vweird.f32 %v588_v7 }
 0x1d2   : > { %1832 = vrsqrt.f32 %v712_v8  ;;  %vm720_vm5 = vweird.f32 %v712_v8 }
 0x1d4   : > { %v585_v9 = vpop.xlane.xlu1 %584 }
 0x1d5   : > { %v709_v10 = vpop.xlane.xlu2 %708  ;;  %v587_v11 = vmul.f32 %v585_v9, %v2332_v44 }
 0x1d6   : > { %v711_v12 = vmul.f32 %v709_v10, %v2332_v44 }
 0x1d7   : > { %v1831_v13 = vpop.eup %1830  ;;  %v589_v14 = vadd.f32 1e-05, %v587_v11  ;;  %v633_v11 = vsel %vm511_vm0, %v2362_v2, 0.0 }
 0x1d8   : > { %v1833_v15 = vpop.eup %1832  ;;  %v591_v16 = vmul.f32 %v1831_v13, %v588_v7  ;;  %v713_v17 = vadd.f32 1e-05, %v711_v12  ;;  %vm597_vm2 = vweird.f32 %v1831_v13  ;;  %v630_v12 = vsel %vm511_vm0, %v2360_v1, 0.0 }
 0x1d9   : > { %v715_v18 = vmul.f32 %v1833_v15, %v712_v8  ;;  %1834 = vrsqrt.f32 %v589_v14  ;;  %vm721_vm3 = vweird.f32 %v1833_v15  ;;  %vm598_vm6 = vmor %vm596_vm4, %vm597_vm2  ;;  %vm606_vm10 = vweird.f32 %v589_v14 }
 0x1da   : > { %v592_v19 = vmul.f32 %v1831_v13, %v591_v16  ;;  %1836 = vrsqrt.f32 %v713_v17  ;;  %vm722_vm7 = vmor %vm720_vm5, %vm721_vm3  ;;  %vm730_vm11 = vweird.f32 %v713_v17 }
 0x1db   : > { %v716_v20 = vmul.f32 %v1833_v15, %v715_v18 }
 0x1dc   : > { %v593_v21 = vmul.f32 0.5, %v592_v19 }
 0x1dd   : > { %v717_v22 = vmul.f32 0.5, %v716_v20 }
 0x1de   : > { %v594_v23 = vsub.f32 1.5, %v593_v21 }
 0x1df   : > { %v1835_v24 = vpop.eup %1834  ;;  %v718_v25 = vsub.f32 1.5, %v717_v22 }
 0x1e0   : > { %v1837_v26 = vpop.eup %1836  ;;  %v595_v28 = vmul.f32 %v1831_v13, %v594_v23  ;;  %v601_v29 = vmul.f32 %v1835_v24, %v589_v14  ;;  %vm607_vm8 = vweird.f32 %v1835_v24 }
 0x1e1   : > { %v719_v30 = vmul.f32 %v1833_v15, %v718_v25  ;;  %v725_v31 = vmul.f32 %v1837_v26, %v713_v17  ;;  %vm731_vm9 = vweird.f32 %v1837_v26  ;;  %vm608_vm12 = vmor %vm606_vm10, %vm607_vm8 }
 0x1e2   : > { %v599_v34 = vsel %vm598_vm6, %v1831_v13, %v595_v28  ;;  %v602_v35 = vmul.f32 %v1835_v24, %v601_v29  ;;  %vm732_vm13 = vmor %vm730_vm11, %vm731_vm9 }
 0x1e3   : > { %v723_v36 = vsel %vm722_vm7, %v1833_v15, %v719_v30  ;;  %v610_v37 = vmul.f32 %v599_v34, %v2337_v49  ;;  %v726_v38 = vmul.f32 %v1837_v26, %v725_v31 }
 0x1e4   : > { %v734_v40 = vmul.f32 %v723_v36, %v2339_v50  ;;  %v603_v41 = vmul.f32 0.5, %v602_v35 }
 0x1e5   : > { %v727_v42 = vmul.f32 0.5, %v726_v38  ;;  %v615_v46 = vmul.f32 %v2371_v32, %v610_v37 }
 0x1e6   : > { %v736_v43 = vmul.f32 %v2371_v32, %v734_v40  ;;  %v604_v45 = vsub.f32 1.5, %v603_v41 }
 0x1e7   : > { %v728_v47 = vsub.f32 1.5, %v727_v42  ;;  %v620_v53 = vadd.f32 %v2377_v39, %v615_v46 }
 0x1e8   : > { %v738_v48 = vadd.f32 %v2377_v39, %v736_v43  ;;  %v605_v49 = vmul.f32 %v1835_v24, %v604_v45 }
 0x1e9   : > { %v729_v51 = vmul.f32 %v1837_v26, %v728_v47  ;;  %v740_v61 = vmul.f32 0.14433756, %v620_v53 }
 0x1ea   : > { %v744_v52 = vpack.c.bf16 %v738_v48, %v738_v48  ;;  %v609_v50 = vsel %vm608_vm12, %v1835_v24, %v605_v49 }
 0x1eb   : > { %v733_v54 = vsel %vm732_vm13, %v1837_v26, %v729_v51  ;;  %v611_v55 = vmul.f32 %v609_v50, %v2350_v59  ;;  %v742_v0 = vpack.c.bf16 %v740_v61, %v740_v61 }
 0x1ec   : > { %v735_v56 = vmul.f32 %v733_v54, %v2352_v60  ;;  %772 = vrot.lane.b32.xlu2 %v744_v52, %s2069_s27  ;;  %776 = vrot.lane.b32.xlu0 %v744_v52, %s2070_s15  ;;  %v817_v3 = vunpack.c.l.b16 %v744_v52 }
 0x1ed   : > { %v616_v57 = vmul.f32 %v2371_v32, %v611_v55  ;;  %780 = vrot.lane.b32.xlu1 %v744_v52, %s2071_s17  ;;  %v814_v9 = vunpack.c.l.b16 %v742_v0 }
 0x1ee   : > { %v737_v58 = vmul.f32 %v2371_v32, %v735_v56 }
 0x1ef   : > { %v621_v62 = vadd.f32 %v2377_v39, %v616_v57 }
 0x1f0   : > { %v739_v59 = vadd.f32 %v2377_v39, %v737_v58 }
 0x1f1   : > { %v741_v60 = vmul.f32 0.14433756, %v621_v62 }
 0x1f2   : > { %v745_v63 = vpack.c.bf16 %v739_v59, %v739_v59 }
 0x1f3   : > { %v2396_v5 = vpack.c.bf16 %v741_v60, %v741_v60 }
 0x1f4   : > { %784 = vrot.lane.b32.xlu2 %v744_v52, %s2072_s16  ;;  %788 = vrot.lane.b32.xlu0 %v744_v52, %s2073_s18  ;;  %v818_v4 = vunpack.c.l.b16 %v745_v63 }
 0x1f5   : > { %750 = vrot.lane.b32.xlu1 %v742_v0, %s2069_s27  ;;  %v815_v8 = vunpack.c.l.b16 %v2396_v5 }
 0x1f6   : > { %v819_v6 = vpack.c.b16 %v818_v4, %v817_v3 }
 0x1f7   : > { %v816_v10 = vpack.c.b16 %v815_v8, %v814_v9 }
 0x1f8   : > { %v825_v7 = vsel %vm820_vm14, %v819_v6, 0 }
 0x1f9   : > { %834 = vmatpush.bf16.xpose.msra.mxu2 %v825_v7 }
 0x1fc   : > { %766 = vrot.lane.b32.xlu2 %v742_v0, %s2073_s18  ;;  %758 = vrot.lane.b32.xlu0 %v742_v0, %s2071_s17 }
 0x1fd   : > { %754 = vrot.lane.b32.xlu1 %v742_v0, %s2070_s15 }
 0x200   : > { %1727 = vmatmul.msk.bf16.vlgmr.msra.gmra.mxu2 %vm820_vm14, %v816_v10 }
 0x204   : > { %778 = vrot.lane.b32.xlu2 %v745_v63, %s2070_s15  ;;  %774 = vrot.lane.b32.xlu0 %v745_v63, %s2069_s27 }
 0x205   : > { %762 = vrot.lane.b32.xlu1 %v742_v0, %s2072_s16 }
 0x20c   : > { %790 = vrot.lane.b32.xlu2 %v745_v63, %s2073_s18  ;;  %782 = vrot.lane.b32.xlu0 %v745_v63, %s2071_s17 }
 0x20d   : > { %786 = vrot.lane.b32.xlu1 %v745_v63, %s2072_s16 }
 0x214   : > { %756 = vrot.lane.b32.xlu0 %v2396_v5, %s2070_s15  ;;  %752 = vrot.lane.b32.xlu2 %v2396_v5, %s2069_s27 }
 0x21c   : > { %764 = vrot.lane.b32.xlu0 %v2396_v5, %s2072_s16  ;;  %760 = vrot.lane.b32.xlu2 %v2396_v5, %s2071_s17 }
 0x245   : > { %634 = vadd.xlane.f32.xlu2 %v633_v11 }
 0x246   : > { %v773_v13 = vpop.permute.xlu2 %772  ;;  %631 = vadd.xlane.f32.xlu0 %v630_v12 }
 0x24e   : > { %v785_v14 = vpop.permute.xlu2 %784 }
 0x24f   : > { %v922_v46 = vunpack.c.l.b16 %v785_v14 }
 0x256   : > { %v2422_v15 = vpop.permute.xlu2 %766 }
 0x25a   : > { %687 = vrot.lane.b32.xlu0 %v2377_v39, %s2074_s29 }
 0x25d   : > { %682 = vrot.lane.b32.xlu2 %v2371_v32, %s2074_s29  ;;  %v844_v32 = vunpack.c.l.b16 %v773_v13 }
 0x25e   : > { %v779_v16 = vpop.permute.xlu2 %778  ;;  %v777_v17 = vpop.permute.xlu0 %776 }
 0x25f   : > { %v871_v18 = vunpack.c.l.b16 %v779_v16  ;;  %v870_v19 = vunpack.c.l.b16 %v777_v17  ;;  %v781_v20 = vpop.permute.xlu1 %780 }
 0x260   : > { %v896_v41 = vunpack.c.l.b16 %v781_v20 }
 0x261   : > { %v872_v2 = vpack.c.b16 %v871_v18, %v870_v19 }
 0x263   : > { %v877_v21 = vsel %vm820_vm14, %v872_v2, 0 }
 0x264   : > { %886 = vmatpush.bf16.xpose.msrb.mxu2 %v877_v21 }
 0x266   : > { %v791_v1 = vpop.permute.xlu2 %790  ;;  %v789_v22 = vpop.permute.xlu0 %788 }
 0x267   : > { %v949_v23 = vunpack.c.l.b16 %v791_v1  ;;  %v948_v24 = vunpack.c.l.b16 %v789_v22  ;;  %v751_v25 = vpop.permute.xlu1 %750 }
 0x268   : > { %v841_v42 = vunpack.c.l.b16 %v751_v25 }
 0x269   : > { %v950_v26 = vpack.c.b16 %v949_v23, %v948_v24 }
 0x26b   : > { %v955_v28 = vsel %vm820_vm14, %v950_v26, 0 }
 0x26c   : > { %964 = vmatpush.bf16.xpose.msrb.mxu1 %v955_v28 }
 0x26e   : > { %v759_v29 = vpop.permute.xlu0 %758  ;;  %v753_v37 = vpop.permute.xlu2 %752 }
 0x26f   : > { %v755_v30 = vpop.permute.xlu1 %754  ;;  %v842_v39 = vunpack.c.l.b16 %v753_v37  ;;  %v893_v60 = vunpack.c.l.b16 %v759_v29 }
 0x270   : > { %v867_v55 = vunpack.c.l.b16 %v755_v30 }
 0x271   : > { %v843_v48 = vpack.c.b16 %v842_v39, %v841_v42 }
 0x276   : > { %v775_v31 = vpop.permute.xlu0 %774  ;;  %v761_v58 = vpop.permute.xlu2 %760 }
 0x277   : > { %v845_v34 = vunpack.c.l.b16 %v775_v31  ;;  %v763_v35 = vpop.permute.xlu1 %762  ;;  %v894_v59 = vunpack.c.l.b16 %v761_v58 }
 0x278   : > { %v919_v0 = vunpack.c.l.b16 %v763_v35 }
 0x279   : > { %v846_v36 = vpack.c.b16 %v845_v34, %v844_v32  ;;  %v895_v4 = vpack.c.b16 %v894_v59, %v893_v60 }
 0x27b   : > { %v851_v38 = vsel %vm820_vm14, %v846_v36, 0 }
 0x27c   : > { %860 = vmatpush.bf16.xpose.msra.mxu3 %v851_v38 }
 0x27e   : > { %v783_v40 = vpop.permute.xlu0 %782 }
 0x27f   : > { %v897_v43 = vunpack.c.l.b16 %v783_v40  ;;  %v787_v45 = vpop.permute.xlu1 %786 }
 0x280   : > { %v923_v47 = vunpack.c.l.b16 %v787_v45 }
 0x281   : > { %v898_v49 = vpack.c.b16 %v897_v43, %v896_v41 }
 0x282   : > { %v924_v51 = vpack.c.b16 %v923_v47, %v922_v46 }
 0x283   : > { %v2429_v52 = vpop.f32.mrf.mxu2  ;;  %1728 = vmatmul.msk.bf16.vlgmr.msra.gmra.mxu3 %vm820_vm14, %v843_v48  ;;  %v903_v50 = vsel %vm820_vm14, %v898_v49, 0 }
 0x284   : > { %912 = vmatpush.bf16.xpose.msrb.mxu3 %v903_v50  ;;  %v929_v53 = vsel %vm820_vm14, %v924_v51, 0 }
 0x285   : > { %938 = vmatpush.bf16.xpose.msrb.mxu0 %v929_v53 }
 0x286   : > { %v757_v54 = vpop.permute.xlu0 %756 }
 0x287   : > { %v868_v56 = vunpack.c.l.b16 %v757_v54 }
 0x289   : > { %v869_v57 = vpack.c.b16 %v868_v56, %v867_v55 }
 0x28b   : > { %v2434_v61 = vpop.f32.mrf.mxu2  ;;  %1729 = vmatmul.msk.bf16.vlgmr.msrb.gmra.mxu2 %vm820_vm14, %v869_v57 }
 0x28c   : > { %v975_v62 = vsel %vm971_vm15, %v2434_v61, -inf }
 0x28d   : > { %976 = vmax.xlane.f32.xlu2 %v975_v62 }
 0x28e   : > { %v765_v63 = vpop.permute.xlu0 %764 }
 0x28f   : > { %v920_v3 = vunpack.c.l.b16 %v765_v63 }
 0x291   : > { %v921_v6 = vpack.c.b16 %v920_v3, %v919_v0 }
 0x293   : > { %1730 = vmatmul.msk.bf16.vlgmr.msrb.gmra.mxu3 %vm820_vm14, %v895_v4  ;;  %1731 = vmatmul.msk.bf16.vlgmr.msrb.gmra.mxu0 %vm820_vm14, %v921_v6 }
 0x2b8   : > { %v635_v9 = vpop.xlane.xlu2 %634 }
 0x2b9   : > { %v632_v7 = vpop.xlane.xlu0 %631  ;;  %v637_v11 = vmul.f32 %v635_v9, %v2332_v44 }
 0x2ba   : > { %v636_v8 = vmul.f32 %v632_v7, %v2332_v44 }
 0x2bb   : > { %v639_v13 = vsub.f32 %v2325_v33, %v637_v11  ;;  %v945_v33 = vunpack.c.l.b16 %v2422_v15 }
 0x2bc   : > { %v638_v10 = vsub.f32 %v2318_v27, %v636_v8  ;;  %v972_v27 = vsel %vm971_vm15, %v2429_v52, -inf }
 0x2bd   : > { %v641_v14 = vmul.f32 %v639_v13, %v639_v13 }
 0x2be   : > { %v640_v12 = vmul.f32 %v638_v10, %v638_v10 }
 0x2c0   : > { %644 = vrot.lane.b32.xlu1 %v640_v12, %s2067_s26  ;;  %v683_v39 = vpop.permute.xlu2 %682 }
 0x2c8   : > { %646 = vrot.lane.b32.xlu1 %v641_v14, %s2067_s26 }
 0x2d0   : > { %768 = vrot.lane.b32.xlu1 %v2396_v5, %s2073_s18  ;;  %v688_v5 = vpop.permute.xlu0 %687 }
 0x300   : > { %v977_v57 = vpop.xlane.xlu2 %976 }
 0x301   : > { %v1009_v58 = vsub.f32 %v2434_v61, %v977_v57 }
 0x303   : > { %v1022_v59 = vmul.f32 1.442695, %v1009_v58 }
 0x306   : > { %v2468_v56 = vpop.f32.mrf.mxu3 }
 0x30e   : > { %v2472_v62 = vpop.f32.mrf.mxu3  ;;  %v2474_v63 = vpop.f32.mrf.mxu2 }
 0x30f   : > { %v984_v60 = vsel %vm971_vm15, %v2474_v63, -inf }
 0x310   : > { %v940_v12 = vpop.f32.mrf.mxu0 }
 0x316   : > { %v2478_v0 = vpop.f32.mrf.mxu3 }
 0x31e   : > { %v2485_v8 = vpop.f32.mrf.mxu3 }
 0x31f   : > { %v993_v9 = vsel %vm971_vm15, %v2485_v8, -inf }
 0x332   : > { %v645_v16 = vpop.permute.xlu1 %644 }
 0x333   : > { %v650_v17 = vsel %vm511_vm0, %v645_v16, 0.0  ;;  %v990_v16 = vsel %vm971_vm15, %v2478_v0, -inf }
 0x334   : > { %651 = vadd.xlane.f32.xlu1 %v650_v17 }
 0x33a   : > { %v647_v18 = vpop.permute.xlu1 %646 }
 0x33b   : > { %v653_v19 = vsel %vm511_vm0, %v647_v18, 0.0  ;;  %v2499_v18 = vpop.f32.mrf.mxu0 }
 0x33c   : > { %973 = vmax.xlane.f32.xlu1 %v972_v27  ;;  %654 = vadd.xlane.f32.xlu0 %v653_v19  ;;  %v999_v27 = vsel %vm971_vm15, %v2499_v18, -inf }
 0x342   : > { %v769_v20 = vpop.permute.xlu1 %768 }
 0x343   : > { %v946_v2 = vunpack.c.l.b16 %v769_v20 }
 0x345   : > { %v947_v21 = vpack.c.b16 %v946_v2, %v945_v33  ;;  %v981_v33 = vsel %vm971_vm15, %v2472_v62, -inf  ;;  %v2509_v2 = vpop.f32.mrf.mxu2 }
 0x347   : > { %1732 = vmatmul.msk.bf16.vlgmr.msrb.gmra.mxu1 %vm820_vm14, %v947_v21  ;;  %v987_v21 = vsel %vm971_vm15, %v2509_v2, -inf }
 0x3a7   : > { %v652_v1 = vpop.xlane.xlu1 %651 }
 0x3a8   : > { %v656_v22 = vmul.f32 %v652_v1, %v2332_v44 }
 0x3aa   : > { %v658_v23 = vadd.f32 1e-05, %v656_v22 }
 0x3ac   : > { %1838 = vrsqrt.f32 %v658_v23  ;;  %vm666_vm2 = vweird.f32 %v658_v23 }
 0x3af   : > { %v655_v24 = vpop.xlane.xlu0 %654  ;;  %v974_v4 = vpop.xlane.xlu1 %973 }
 0x3b0   : > { %v657_v25 = vmul.f32 %v655_v24, %v2332_v44  ;;  %v1008_v6 = vsub.f32 %v2429_v52, %v974_v4 }
 0x3b2   : > { %v1839_v26 = vpop.eup %1838  ;;  %v659_v28 = vadd.f32 1e-05, %v657_v25  ;;  %v1020_v7 = vmul.f32 1.442695, %v1008_v6 }
 0x3b3   : > { %v661_v29 = vmul.f32 %v1839_v26, %v658_v23  ;;  %vm667_vm1 = vweird.f32 %v1839_v26 }
 0x3b4   : > { %1840 = vrsqrt.f32 %v659_v28  ;;  %vm668_vm3 = vmor %vm666_vm2, %vm667_vm1  ;;  %vm676_vm5 = vweird.f32 %v659_v28 }
 0x3b5   : > { %v662_v30 = vmul.f32 %v1839_v26, %v661_v29  ;;  %1842 = vpow2.f32 %v1022_v59 }
 0x3b6   : > { %1844 = vpow2.f32 %v1020_v7 }
 0x3b7   : > { %v663_v31 = vmul.f32 0.5, %v662_v30 }
 0x3b9   : > { %v664_v15 = vsub.f32 1.5, %v663_v31 }
 0x3ba   : > { %v1841_v32 = vpop.eup %1840 }
 0x3bb   : > { %v665_v34 = vmul.f32 %v1839_v26, %v664_v15  ;;  %v671_v35 = vmul.f32 %v1841_v32, %v659_v28  ;;  %vm677_vm4 = vweird.f32 %v1841_v32  ;;  %v2480_v3 = vpop.eup %1842 }
 0x3bc   : > { %vm678_vm6 = vmor %vm676_vm5, %vm677_vm4  ;;  %v1047_v61 = vsel %vm971_vm15, %v2480_v3, 0.0  ;;  %v2491_v11 = vpop.eup %1844 }
 0x3bd   : > { %v669_v36 = vsel %vm668_vm3, %v1839_v26, %v665_v34  ;;  %v672_v37 = vmul.f32 %v1841_v32, %v671_v35  ;;  %v1044_v52 = vsel %vm971_vm15, %v2491_v11, 0.0 }
 0x3be   : > { %v680_v38 = vmul.f32 %v669_v36, %v638_v10  ;;  %v978_v10 = vsel %vm971_vm15, %v2468_v56, -inf }
 0x3bf   : > { %v673_v40 = vmul.f32 0.5, %v672_v37 }
 0x3c0   : > { %v685_v41 = vmul.f32 %v683_v39, %v680_v38 }
 0x3c1   : > { %v674_v42 = vsub.f32 1.5, %v673_v40 }
 0x3c2   : > { %v690_v43 = vadd.f32 %v688_v5, %v685_v41 }
 0x3c3   : > { %v675_v45 = vmul.f32 %v1841_v32, %v674_v42 }
 0x3c4   : > { %v746_v46 = vpack.c.bf16 %v690_v43, %v690_v43  ;;  %v966_v14 = vpop.f32.mrf.mxu1 }
 0x3c5   : > { %v679_v47 = vsel %vm678_vm6, %v1841_v32, %v675_v45  ;;  %v1002_v17 = vsel %vm971_vm15, %v966_v14, -inf }
 0x3c6   : > { %v681_v48 = vmul.f32 %v679_v47, %v639_v13  ;;  %806 = vrot.lane.b32.xlu2 %v746_v46, %s2072_s16  ;;  %794 = vrot.lane.b32.xlu1 %v746_v46, %s2069_s27  ;;  %v1277_v53 = vunpack.c.l.b16 %v746_v46  ;;  %v996_v13 = vsel %vm971_vm15, %v940_v12, -inf }
 0x3c8   : > { %v686_v49 = vmul.f32 %v683_v39, %v681_v48 }
 0x3ca   : > { %v691_v51 = vadd.f32 %v688_v5, %v686_v49 }
 0x3cc   : > { %v747_v50 = vpack.c.bf16 %v691_v51, %v691_v51  ;;  %v2503_v19 = vpop.f32.mrf.mxu1 }
 0x3cd   : > { %v1005_v20 = vsel %vm971_vm15, %v2503_v19, -inf }
 0x3ce   : > { %796 = vrot.lane.b32.xlu0 %v747_v50, %s2069_s27  ;;  %798 = vrot.lane.b32.xlu2 %v746_v46, %s2070_s15  ;;  %v1278_v54 = vunpack.c.l.b16 %v747_v50  ;;  %s1611_s27 = sshll.u32 %s490_s12, 4  ;;  %s1612_s27 = int_to_ptr.vmem [resolvable:$true] %s1611_s27 }
 0x3cf   : > { %810 = vrot.lane.b32.xlu1 %v746_v46, %s2073_s18 }
 0x3d0   : > { %v2462_v55 = vpack.c.b16 %v1278_v54, %v1277_v53 }
 0x3d6   : > { %808 = vrot.lane.b32.xlu0 %v747_v50, %s2072_s16 }
 0x3d7   : > { %802 = vrot.lane.b32.xlu1 %v746_v46, %s2071_s17 }
 0x3de   : > { %812 = vrot.lane.b32.xlu0 %v747_v50, %s2073_s18 }
 0x3df   : > { %800 = vrot.lane.b32.xlu1 %v747_v50, %s2070_s15 }
 0x3e7   : > { %804 = vrot.lane.b32.xlu1 %v747_v50, %s2071_s17  ;;  %s1601_s17 = scalar_lea.sflag [#allocation4], %s2271_s19 }
 0x3f7   : > { %985 = vmax.xlane.f32.xlu2 %v984_v60 }
 0x3ff   : > { %1048 = vadd.xlane.f32.xlu2 %v1047_v61 }
 0x407   : > { %994 = vmax.xlane.f32.xlu2 %v993_v9 }
 0x408   : > { %979 = vmax.xlane.f32.xlu0 %v978_v10 }
 0x410   : > { %1045 = vadd.xlane.f32.xlu0 %v1044_v52 }
 0x411   : > { %997 = vmax.xlane.f32.xlu1 %v996_v13 }
 0x418   : > { %991 = vmax.xlane.f32.xlu0 %v990_v16 }
 0x419   : > { %1003 = vmax.xlane.f32.xlu1 %v1002_v17 }
 0x420   : > { %v807_v26 = vpop.permute.xlu2 %806 }
 0x421   : > { %1000 = vmax.xlane.f32.xlu1 %v999_v27  ;;  %v1389_v29 = vunpack.c.l.b16 %v807_v26 }
 0x428   : > { %v2523_v42 = vpop.permute.xlu2 %798 }
 0x429   : > { %1006 = vmax.xlane.f32.xlu1 %v1005_v20 }
 0x431   : > { %982 = vmax.xlane.f32.xlu1 %v981_v33 }
 0x438   : > { %v795_v5 = vpop.permute.xlu1 %794 }
 0x439   : > { %988 = vmax.xlane.f32.xlu1 %v987_v21  ;;  %v1305_v22 = vunpack.c.l.b16 %v795_v5 }
 0x440   : > { %v797_v1 = vpop.permute.xlu0 %796 }
 0x441   : > { %v1306_v23 = vunpack.c.l.b16 %v797_v1  ;;  %v811_v24 = vpop.permute.xlu1 %810 }
 0x442   : > { %v1417_v34 = vunpack.c.l.b16 %v811_v24 }
 0x443   : > { %v1307_v25 = vpack.c.b16 %v1306_v23, %v1305_v22 }
 0x445   : > { %1308 = vrot.lane.b32.xlu0 %v1307_v25, %s2067_s26 }
 0x448   : > { %v809_v28 = vpop.permute.xlu0 %808 }
 0x449   : > { %v1390_v30 = vunpack.c.l.b16 %v809_v28  ;;  %v803_v31 = vpop.permute.xlu1 %802 }
 0x44a   : > { %v1361_v39 = vunpack.c.l.b16 %v803_v31 }
 0x44b   : > { %v1391_v15 = vpack.c.b16 %v1390_v30, %v1389_v29 }
 0x44d   : > { %1392 = vrot.lane.b32.xlu2 %v1391_v15, %s2067_s26 }
 0x450   : > { %v813_v32 = vpop.permute.xlu0 %812 }
 0x451   : > { %v1418_v35 = vunpack.c.l.b16 %v813_v32  ;;  %v2515_v36 = vpop.permute.xlu1 %800 }
 0x452   : > { %1280 = vrot.lane.b32.xlu1 %v2462_v55, %s2067_s26 }
 0x453   : > { %v2519_v37 = vpack.c.b16 %v1418_v35, %v1417_v34 }
 0x459   : > { %v805_v38 = vpop.permute.xlu1 %804 }
 0x45a   : > { %v1362_v40 = vunpack.c.l.b16 %v805_v38 }
 0x45c   : > { %v2521_v41 = vpack.c.b16 %v1362_v40, %v1361_v39 }
 0x46a   : > { %v986_v47 = vpop.xlane.xlu2 %985 }
 0x472   : > { %v2530_v54 = vpop.xlane.xlu2 %1048 }
 0x473   : > { %vm1100_vm11 = vweird.f32 %v2530_v54 }
 0x47a   : > { %v995_v6 = vpop.xlane.xlu2 %994 }
 0x47b   : > { %v980_v43 = vpop.xlane.xlu0 %979  ;;  %v1015_v10 = vsub.f32 %v2485_v8, %v995_v6 }
 0x47c   : > { %v1010_v45 = vsub.f32 %v2468_v56, %v980_v43  ;;  %v1012_v56 = vsub.f32 %v2474_v63, %v986_v47  ;;  %v1106_v47 = vand.u32 2147483648, %v2530_v54 }
 0x47d   : > { %v1034_v13 = vmul.f32 1.442695, %v1015_v10 }
 0x47e   : > { %v1024_v46 = vmul.f32 1.442695, %v1010_v45  ;;  %v1028_v4 = vmul.f32 1.442695, %v1012_v56  ;;  %v1107_v56 = vor.u32 1.1754944e-38, %v1106_v47 }
 0x480   : > { %1846 = vpow2.f32 %v1024_v46 }
 0x483   : > { %v2541_v52 = vpop.xlane.xlu0 %1045 }
 0x484   : > { %v998_v48 = vpop.xlane.xlu1 %997  ;;  %v1091_v45 = vand.u32 2147483648, %v2541_v52  ;;  %vm1085_vm9 = vweird.f32 %v2541_v52 }
 0x485   : > { %v1016_v49 = vsub.f32 %v940_v12, %v998_v48  ;;  %v1104_v48 = vand.u32 2147483647, %v2530_v54 }
 0x486   : > { %v2526_v51 = vpop.eup %1846 }
 0x487   : > { %v1036_v50 = vmul.f32 1.442695, %v1016_v49  ;;  %v1050_v53 = vsel %vm971_vm15, %v2526_v51, 0.0  ;;  %vm1105_vm1 = vcmp.eq.f32.partialorder %v1104_v48, 8.507059e+37 }
 0x488   : > { %1051 = vadd.xlane.f32.xlu1 %v1050_v53  ;;  %v1092_v53 = vor.u32 1.1754944e-38, %v1091_v45 }
 0x489   : > { %1848 = vpow2.f32 %v1036_v50 }
 0x48b   : > { %v992_v1 = vpop.xlane.xlu0 %991 }
 0x48c   : > { %v1004_v55 = vpop.xlane.xlu1 %1003  ;;  %v1014_v26 = vsub.f32 %v2478_v0, %v992_v1 }
 0x48d   : > { %v1018_v57 = vsub.f32 %v966_v14, %v1004_v55 }
 0x48e   : > { %v1032_v32 = vmul.f32 1.442695, %v1014_v26 }
 0x48f   : > { %v2532_v58 = vpop.eup %1848  ;;  %v1040_v59 = vmul.f32 1.442695, %v1018_v57 }
 0x490   : > { %v1068_v60 = vsel %vm971_vm15, %v2532_v58, 0.0 }
 0x491   : > { %1850 = vpow2.f32 %v1040_v59  ;;  %1069 = vadd.xlane.f32.xlu2 %v1068_v60 }
 0x492   : > { %1852 = vpow2.f32 %v1028_v4 }
 0x494   : > { %v1001_v61 = vpop.xlane.xlu1 %1000 }
 0x495   : > { %v1017_v7 = vsub.f32 %v2499_v18, %v1001_v61 }
 0x497   : > { %v2538_v9 = vpop.eup %1850  ;;  %v1038_v12 = vmul.f32 1.442695, %v1017_v7 }
 0x498   : > { %v1074_v63 = vsel %vm971_vm15, %v2538_v9, 0.0  ;;  %v2546_v16 = vpop.eup %1852 }
 0x499   : > { %1854 = vpow2.f32 %v1038_v12  ;;  %1075 = vadd.xlane.f32.xlu2 %v1074_v63  ;;  %v1056_v27 = vsel %vm971_vm15, %v2546_v16, 0.0 }
 0x49a   : > { %1856 = vrcp.f32 %v2541_v52 }
 0x49b   : > { %1858 = vrcp.f32 %v2530_v54 }
 0x49c   : > { %v1007_v14 = vpop.xlane.xlu1 %1006  ;;  %1860 = vpow2.f32 %v1034_v13 }
 0x49d   : > { %v1019_v17 = vsub.f32 %v2503_v19, %v1007_v14 }
 0x49f   : > { %v2550_v18 = vpop.eup %1854  ;;  %v1042_v8 = vmul.f32 1.442695, %v1019_v17 }
 0x4a0   : > { %v1071_v20 = vsel %vm971_vm15, %v2550_v18, 0.0  ;;  %v1857_v33 = vpop.eup %1856 }
 0x4a1   : > { %1862 = vpow2.f32 %v1042_v8  ;;  %1057 = vadd.xlane.f32.xlu2 %v1056_v27  ;;  %1072 = vadd.xlane.f32.xlu0 %v1071_v20  ;;  %v1859_v21 = vpop.eup %1858  ;;  %v1081_v5 = vmul.f32 %v1857_v33, %v2541_v52  ;;  %vm1086_vm7 = vweird.f32 %v1857_v33  ;;  %v1334_v8 = vunpack.c.l.b16 %v2515_v36 }
 0x4a2   : > { %v2557_v19 = vpop.eup %1860  ;;  %v1096_v24 = vmul.f32 %v1859_v21, %v2530_v54  ;;  %vm1101_vm8 = vweird.f32 %v1859_v21  ;;  %vm1087_vm10 = vmor %vm1085_vm9, %vm1086_vm7 }
 0x4a3   : > { %v1082_v29 = vsub.f32 1.0, %v1081_v5  ;;  %v1065_v30 = vsel %vm971_vm15, %v2557_v19, 0.0  ;;  %vm1102_vm12 = vmor %vm1100_vm11, %vm1101_vm8 }
 0x4a4   : > { %v983_v22 = vpop.xlane.xlu1 %982  ;;  %v1097_v15 = vsub.f32 1.0, %v1096_v24 }
 0x4a5   : > { %v1011_v23 = vsub.f32 %v2472_v62, %v983_v22  ;;  %v1083_v62 = vmul.f32 %v1857_v33, %v1082_v29 }
 0x4a6   : > { %v1098_v38 = vmul.f32 %v1859_v21, %v1097_v15 }
 0x4a7   : > { %v2561_v25 = vpop.eup %1862  ;;  %v1026_v28 = vmul.f32 1.442695, %v1011_v23  ;;  %v1084_v40 = vadd.f32 %v1857_v33, %v1083_v62  ;;  %v1393_v14 = vpop.permute.xlu2 %1392 }
 0x4a8   : > { %v1077_v31 = vsel %vm971_vm15, %v2561_v25, 0.0  ;;  %v1099_v46 = vadd.f32 %v1859_v21, %v1098_v38 }
 0x4a9   : > { %1864 = vpow2.f32 %v1026_v28  ;;  %1066 = vadd.xlane.f32.xlu2 %v1065_v30  ;;  %1078 = vadd.xlane.f32.xlu0 %v1077_v31  ;;  %v1088_v49 = vsel %vm1087_vm10, %v1857_v33, %v1084_v40 }
 0x4aa   : > { %1866 = vpow2.f32 %v1032_v32  ;;  %v1103_v55 = vsel %vm1102_vm12, %v1859_v21, %v1099_v46 }
 0x4ab   : > { %v1108_v6 = vsel %vm1105_vm1, %v1107_v56, %v1103_v55 }
 0x4ac   : > { %v989_v34 = vpop.xlane.xlu1 %988  ;;  %v1109_v7 = vmul.f32 %v2480_v3, %v1108_v6  ;;  %v1333_v3 = vunpack.c.l.b16 %v2523_v42 }
 0x4ad   : > { %v1013_v35 = vsub.f32 %v2509_v2, %v989_v34  ;;  %v1089_v2 = vand.u32 2147483647, %v2541_v52 }
 0x4ae   : > { %v1261_v12 = vpack.c.bf16 %v1109_v7, %v1109_v7 }
 0x4af   : > { %v2569_v39 = vpop.eup %1864  ;;  %v1030_v0 = vmul.f32 1.442695, %v1013_v35  ;;  %vm1090_vm13 = vcmp.eq.f32.partialorder %v1089_v2, 8.507059e+37 }
 0x4b0   : > { %v1053_v43 = vsel %vm971_vm15, %v2569_v39, 0.0  ;;  %v2579_v50 = vpop.eup %1866  ;;  %v1093_v59 = vsel %vm1090_vm13, %v1092_v53, %v1088_v49  ;;  %v1275_v63 = vunpack.c.l.b16 %v1261_v12 }
 0x4b1   : > { %1868 = vpow2.f32 %v1030_v0  ;;  %1054 = vadd.xlane.f32.xlu0 %v1053_v43  ;;  %v1062_v4 = vsel %vm971_vm15, %v2579_v50, 0.0  ;;  %v1094_v61 = vmul.f32 %v2491_v11, %v1093_v59  ;;  %v1335_v11 = vpack.c.b16 %v1334_v8, %v1333_v3 }
 0x4b3   : > { %v1260_v10 = vpack.c.bf16 %v1094_v61, %v1094_v61 }
 0x4b5   : > { %v1274_v52 = vunpack.c.l.b16 %v1260_v10 }
 0x4b7   : > { %v2581_v57 = vpop.eup %1868  ;;  %v1309_v60 = vpop.permute.xlu0 %1308  ;;  %v1276_v17 = vpack.c.b16 %v1275_v63, %v1274_v52 }
 0x4b8   : > { %1321 = vmatpush.bf16.msra.mxu3 %v1309_v60  ;;  %v1059_v54 = vsel %vm971_vm15, %v2581_v57, 0.0 }
 0x4b9   : > { %1063 = vadd.xlane.f32.xlu0 %v1062_v4  ;;  %1060 = vadd.xlane.f32.xlu1 %v1059_v54 }
 0x4c1   : > { %1364 = vrot.lane.b32.xlu2 %v2521_v41, %s2067_s26 }
 0x4c4   : > { %v1281_v13 = vpop.permute.xlu1 %1280 }
 0x4c5   : > { %1293 = vmatpush.bf16.msra.mxu2 %v1281_v13 }
 0x4c8   : > { %1733 = vmatmul.msk.bf16.vlgmr.msra.gmra.mxu2 %vm971_vm15, %v1276_v17 }
 0x4c9   : > { %1405 = vmatpush.bf16.msrb.mxu2 %v1393_v14 }
 0x4cd   : > { %1420 = vrot.lane.b32.xlu0 %v2519_v37, %s2067_s26 }
 0x4d2   : > { %1336 = vrot.lane.b32.xlu1 %v1335_v11, %s2067_s26 }
 0x4fb   : > { %v1052_v41 = vpop.xlane.xlu1 %1051 }
 0x4fc   : > { %1870 = vrcp.f32 %v1052_v41  ;;  %vm1115_vm4 = vweird.f32 %v1052_v41  ;;  %v1121_v30 = vand.u32 2147483648, %v1052_v41  ;;  %v1119_v32 = vand.u32 2147483647, %v1052_v41 }
 0x4fe   : > { %v1122_v46 = vor.u32 1.1754944e-38, %v1121_v30  ;;  %vm1120_vm8 = vcmp.eq.f32.partialorder %v1119_v32, 8.507059e+37 }
 0x502   : > { %v1871_v20 = vpop.eup %1870 }
 0x503   : > { %v1111_v21 = vmul.f32 %v1871_v20, %v1052_v41  ;;  %vm1116_vm2 = vweird.f32 %v1871_v20 }
 0x504   : > { %v1070_v27 = vpop.xlane.xlu2 %1069  ;;  %vm2604_vm5 = vmor %vm1115_vm4, %vm1116_vm2 }
 0x505   : > { %1872 = vrcp.f32 %v1070_v27  ;;  %v1112_v22 = vsub.f32 1.0, %v1111_v21  ;;  %v1211_v31 = vand.u32 2147483648, %v1070_v27  ;;  %vm1205_vm6 = vweird.f32 %v1070_v27 }
 0x506   : > { %v1209_v62 = vand.u32 2147483647, %v1070_v27 }
 0x507   : > { %v1113_v23 = vmul.f32 %v1871_v20, %v1112_v22  ;;  %v1212_v2 = vor.u32 1.1754944e-38, %v1211_v31 }
 0x508   : > { %vm1210_vm9 = vcmp.eq.f32.partialorder %v1209_v62, 8.507059e+37 }
 0x509   : > { %v1114_v26 = vadd.f32 %v1871_v20, %v1113_v23 }
 0x50b   : > { %v1873_v33 = vpop.eup %1872  ;;  %v1118_v35 = vsel %vm2604_vm5, %v1871_v20, %v1114_v26 }
 0x50c   : > { %v2597_v5 = vpop.xlane.xlu2 %1075  ;;  %v1201_v1 = vmul.f32 %v1873_v33, %v1070_v27  ;;  %vm1206_vm3 = vweird.f32 %v1873_v33  ;;  %v1123_v48 = vsel %vm1120_vm8, %v1122_v46, %v1118_v35 }
 0x50d   : > { %1874 = vrcp.f32 %v2597_v5  ;;  %vm1207_vm7 = vmor %vm1205_vm6, %vm1206_vm3  ;;  %v1124_v54 = vmul.f32 %v2526_v51, %v1123_v48  ;;  %vm1235_vm2 = vweird.f32 %v2597_v5  ;;  %v1241_v23 = vand.u32 2147483648, %v2597_v5 }
 0x50e   : > { %v1202_v36 = vsub.f32 1.0, %v1201_v1  ;;  %v1239_v1 = vand.u32 2147483647, %v2597_v5 }
 0x50f   : > { %v1262_v17 = vpack.c.bf16 %v1124_v54, %v1124_v54 }
 0x510   : > { %v1203_v24 = vmul.f32 %v1873_v33, %v1202_v36 }
 0x511   : > { %v2646_v36 = vunpack.c.l.b16 %v1262_v17 }
 0x512   : > { %v1204_v28 = vadd.f32 %v1873_v33, %v1203_v24 }
 0x513   : > { %v2602_v29 = vpop.eup %1874 }
 0x514   : > { %v2600_v37 = vpop.xlane.xlu2 %1057  ;;  %v1073_v42 = vpop.xlane.xlu0 %1072  ;;  %v1208_v40 = vsel %vm1207_vm7, %v1873_v33, %v1204_v28  ;;  %v1231_v43 = vmul.f32 %v2602_v29, %v2597_v5  ;;  %vm1236_vm1 = vweird.f32 %v2602_v29 }
 0x515   : > { %1876 = vrcp.f32 %v1073_v42  ;;  %v1213_v49 = vsel %vm1210_vm9, %v1212_v2, %v1208_v40  ;;  %v1226_v53 = vand.u32 2147483648, %v1073_v42  ;;  %v1224_v60 = vand.u32 2147483647, %v1073_v42  ;;  %vm2651_vm4 = vmor %vm1235_vm2, %vm1236_vm1 }
 0x516   : > { %1878 = vrcp.f32 %v2600_v37  ;;  %v1232_v56 = vsub.f32 1.0, %v1231_v43  ;;  %vm1220_vm11 = vweird.f32 %v1073_v42  ;;  %v1214_v61 = vmul.f32 %v2532_v58, %v1213_v49 }
 0x517   : > { %v1227_v10 = vor.u32 1.1754944e-38, %v1226_v53  ;;  %vm1225_vm13 = vcmp.eq.f32.partialorder %v1224_v60, 8.507059e+37  ;;  %v1151_v27 = vand.u32 2147483648, %v2600_v37  ;;  %vm1145_vm3 = vweird.f32 %v2600_v37 }
 0x518   : > { %v1233_v13 = vmul.f32 %v2602_v29, %v1232_v56  ;;  %v1268_v11 = vpack.c.bf16 %v1214_v61, %v1214_v61 }
 0x519   : > { %v1152_v30 = vor.u32 1.1754944e-38, %v1151_v27 }
 0x51a   : > { %v2638_v20 = vadd.f32 %v2602_v29, %v1233_v13  ;;  %v1386_v24 = vunpack.c.l.b16 %v1268_v11 }
 0x51b   : > { %v1877_v34 = vpop.eup %1876 }
 0x51c   : > { %v2611_v38 = vpop.xlane.xlu2 %1066  ;;  %v2613_v0 = vpop.xlane.xlu0 %1078  ;;  %v1216_v45 = vmul.f32 %v1877_v34, %v1073_v42  ;;  %vm1221_vm10 = vweird.f32 %v1877_v34  ;;  %v1238_v62 = vsel %vm2651_vm4, %v2602_v29, %v2638_v20  ;;  %vm1487_vm4 = vcmask 261120  }
 0x51d   : > { %1880 = vrcp.f32 %v2611_v38  ;;  %v2619_v55 = vpop.eup %1878  ;;  %vm1222_vm12 = vmor %vm1220_vm11, %vm1221_vm10  ;;  %v1194_v43 = vand.u32 2147483647, %v2611_v38  ;;  %vm1190_vm10 = vweird.f32 %v2611_v38  ;;  %v1254_v60 = vand.u32 2147483647, %v2613_v0 }
 0x51e   : > { %v1217_v47 = vsub.f32 1.0, %v1216_v45  ;;  %1882 = vrcp.f32 %v2613_v0  ;;  %v1141_v7 = vmul.f32 %v2619_v55, %v2600_v37  ;;  %vm1146_vm5 = vweird.f32 %v2619_v55 }
 0x51f   : > { %v1196_v45 = vand.u32 2147483648, %v2611_v38  ;;  %vm2681_vm9 = vmor %vm1145_vm3, %vm1146_vm5 }
 0x520   : > { %v1218_v59 = vmul.f32 %v1877_v34, %v1217_v47  ;;  %v1142_v41 = vsub.f32 1.0, %v1141_v7 }
 0x522   : > { %v1219_v6 = vadd.f32 %v1877_v34, %v1218_v59  ;;  %v1143_v28 = vmul.f32 %v2619_v55, %v1142_v41 }
 0x523   : > { %v2621_v4 = vpop.eup %1880 }
 0x524   : > { %v1186_v12 = vmul.f32 %v2621_v4, %v2611_v38  ;;  %v1365_v52 = vpop.permute.xlu2 %1364  ;;  %v2629_v63 = vpop.xlane.xlu0 %1054  ;;  %v1223_v14 = vsel %vm1222_vm12, %v1877_v34, %v1219_v6  ;;  %vm1191_vm7 = vweird.f32 %v2621_v4  ;;  %v1144_v48 = vadd.f32 %v2619_v55, %v1143_v28 }
 0x525   : > { %1884 = vrcp.f32 %v2629_v63  ;;  %1377 = vmatpush.bf16.msra.mxu1 %v1365_v52  ;;  %v2633_v51 = vpop.eup %1882  ;;  %v1228_v58 = vsel %vm1225_vm13, %v1227_v10, %v1223_v14  ;;  %v1136_v47 = vand.u32 2147483648, %v2629_v63  ;;  %v1134_v53 = vand.u32 2147483647, %v2629_v63  ;;  %vm2688_vm11 = vmor %vm1190_vm10, %vm1191_vm7 }
 0x526   : > { %v1229_v8 = vmul.f32 %v2550_v18, %v1228_v58  ;;  %v1187_v3 = vsub.f32 1.0, %v1186_v12  ;;  %v1246_v21 = vmul.f32 %v2633_v51, %v2613_v0  ;;  %v1149_v18 = vand.u32 2147483647, %v2600_v37 }
 0x527   : > { %vm2692_vm12 = vcmp.eq.f32.partialorder %v1194_v43, 8.507059e+37  ;;  %vm1250_vm13 = vweird.f32 %v2613_v0  ;;  %vm1130_vm1 = vweird.f32 %v2629_v63  ;;  %v1197_v10 = vor.u32 1.1754944e-38, %v1196_v45 }
 0x528   : > { %v1269_v33 = vpack.c.bf16 %v1229_v8, %v1229_v8  ;;  %v1188_v42 = vmul.f32 %v2621_v4, %v1187_v3  ;;  %v1247_v35 = vsub.f32 1.0, %v1246_v21  ;;  %vm2667_vm6 = vcmp.eq.f32.partialorder %v1149_v18, 8.507059e+37 }
 0x529   : > { %v1256_v12 = vand.u32 2147483648, %v2613_v0  ;;  %v1137_v52 = vor.u32 1.1754944e-38, %v1136_v47  ;;  %v1148_v13 = vsel %vm2681_vm9, %v2619_v55, %v1144_v48  ;;  %vm1135_vm3 = vcmp.eq.f32.partialorder %v1134_v53, 8.507059e+37 }
 0x52a   : > { %v1387_v34 = vunpack.c.l.b16 %v1269_v33  ;;  %v1189_v2 = vadd.f32 %v2621_v4, %v1188_v42  ;;  %v1248_v59 = vmul.f32 %v2633_v51, %v1247_v35  ;;  %vm1251_vm5 = vweird.f32 %v2633_v51 }
 0x52b   : > { %v1885_v22 = vpop.eup %1884  ;;  %vm2710_vm7 = vcmp.eq.f32.partialorder %v1254_v60, 8.507059e+37  ;;  %v1153_v33 = vsel %vm2667_vm6, %v1152_v30, %v1148_v13  ;;  %vm2729_vm10 = vmor %vm1250_vm13, %vm1251_vm5  ;;  %v1257_v43 = vor.u32 1.1754944e-38, %v1256_v12  ;;  %vm1484_vm5 = vcmask 195584  }
 0x52c   : > { %v1126_v31 = vmul.f32 %v1885_v22, %v2629_v63  ;;  %v2657_v15 = vpop.xlane.xlu0 %1063  ;;  %v2659_v32 = vpop.xlane.xlu1 %1060  ;;  %vm1131_vm8 = vweird.f32 %v1885_v22  ;;  %v1388_v54 = vpack.c.b16 %v1387_v34, %v1386_v24  ;;  %v1193_v38 = vsel %vm2688_vm11, %v2621_v4, %v1189_v2 }
 0x52d   : > { %1886 = vrcp.f32 %v2657_v15  ;;  %vm1132_vm2 = vmor %vm1130_vm1, %vm1131_vm8  ;;  %v1249_v17 = vadd.f32 %v2633_v51, %v1248_v59  ;;  %vm2714_vm8 = vcmp.eq.f32.partialorder %v1239_v1, 8.507059e+37  ;;  %v1198_v55 = vsel %vm2692_vm12, %v1197_v10, %v1193_v38 }
 0x52e   : > { %v1127_v46 = vsub.f32 1.0, %v1126_v31  ;;  %1888 = vrcp.f32 %v2659_v32  ;;  %1737 = vmatmul.msk.bf16.vlgmr.msrb.gmra.mxu2 %vm971_vm15, %v1388_v54  ;;  %vm1175_vm9 = vweird.f32 %v2657_v15  ;;  %v1179_v21 = vand.u32 2147483647, %v2657_v15 }
 0x52f   : > { %v1181_v1 = vand.u32 2147483648, %v2657_v15  ;;  %v1199_v24 = vmul.f32 %v2557_v19, %v1198_v55  ;;  %v1253_v28 = vsel %vm2729_vm10, %v2633_v51, %v1249_v17  ;;  %v1164_v30 = vand.u32 2147483647, %v2659_v32 }
 0x530   : > { %v1128_v49 = vmul.f32 %v1885_v22, %v1127_v46  ;;  %v1166_v31 = vand.u32 2147483648, %v2659_v32  ;;  %v1154_v40 = vmul.f32 %v2546_v16, %v1153_v33  ;;  %vm1180_vm13 = vcmp.eq.f32.partialorder %v1179_v21, 8.507059e+37 }
 0x531   : > { %v1182_v19 = vor.u32 1.1754944e-38, %v1181_v1  ;;  %vm1160_vm1 = vweird.f32 %v2659_v32  ;;  %v1242_v2 = vor.u32 1.1754944e-38, %v1241_v23  ;;  %v1258_v47 = vsel %vm2710_vm7, %v1257_v43, %v1253_v28 }
 0x532   : > { %v1129_v37 = vadd.f32 %v1885_v22, %v1128_v49  ;;  %v1167_v16 = vor.u32 1.1754944e-38, %v1166_v31  ;;  %v1267_v49 = vpack.c.bf16 %v1199_v24, %v1199_v24  ;;  %v1259_v56 = vmul.f32 %v2561_v25, %v1258_v47 }
 0x533   : > { %v1887_v7 = vpop.eup %1886  ;;  %v1243_v5 = vsel %vm2714_vm8, %v1242_v2, %v1238_v62  ;;  %vm1490_vm7 = vcmask 326656   ;;  %v1897_v2 = vld [vmem:[%s2275_s13 + $0x8] sm:$0xff] }
 0x534   : > { %v1133_v14 = vsel %vm1132_vm2, %v1885_v22, %v1129_v37  ;;  %v1171_v63 = vmul.f32 %v1887_v7, %v2657_v15  ;;  %v1889_v58 = vpop.eup %1888  ;;  %vm1176_vm11 = vweird.f32 %v1887_v7  ;;  %v1244_v60 = vmul.f32 %v2538_v9, %v1243_v5 }
 0x535   : > { %v1138_v8 = vsel %vm1135_vm3, %v1137_v52, %v1133_v14  ;;  %v1156_v27 = vmul.f32 %v1889_v58, %v2659_v32  ;;  %vm1161_vm6 = vweird.f32 %v1889_v58  ;;  %vm1177_vm12 = vmor %vm1175_vm9, %vm1176_vm11  ;;  %vm1165_vm3 = vcmp.eq.f32.partialorder %v1164_v30, 8.507059e+37 }
 0x536   : > { %v1139_v11 = vmul.f32 %v2569_v39, %v1138_v8  ;;  %v1172_v41 = vsub.f32 1.0, %v1171_v63  ;;  %vm1162_vm2 = vmor %vm1160_vm1, %vm1161_vm6  ;;  %v1264_v32 = vpack.c.bf16 %v1154_v40, %v1154_v40  ;;  %v1359_v54 = vunpack.c.l.b16 %v1267_v49 }
 0x537   : > { %v1157_v42 = vsub.f32 1.0, %v1156_v27  ;;  %v1271_v37 = vpack.c.bf16 %v1259_v56, %v1259_v56  ;;  %v1270_v62 = vpack.c.bf16 %v1244_v60, %v1244_v60 }
 0x538   : > { %v1263_v22 = vpack.c.bf16 %v1139_v11, %v1139_v11  ;;  %v1173_v39 = vmul.f32 %v1887_v7, %v1172_v41  ;;  %v1330_v61 = vunpack.c.l.b16 %v1264_v32 }
 0x539   : > { %v1158_v35 = vmul.f32 %v1889_v58, %v1157_v42  ;;  %v1415_v25 = vunpack.c.l.b16 %v1271_v37 }
 0x53a   : > { %v1303_v34 = vunpack.c.l.b16 %v1263_v22  ;;  %v1174_v0 = vadd.f32 %v1887_v7, %v1173_v39 }
 0x53b   : > { %v1159_v46 = vadd.f32 %v1889_v58, %v1158_v35 }
 0x53c   : > { %v1178_v45 = vsel %vm1177_vm12, %v1887_v7, %v1174_v0  ;;  %v1304_v51 = vpack.c.b16 %v1303_v34, %v2646_v36  ;;  %v1896_v34 = vld [vmem:[%s2275_s13] sm:$0xff]  ;;  %s2905_s13 = sld [smem:[#allocation22_spill]]  ;;  %vm1598_vm12 = vcmask 73728  }
 0x53d   : > { %v1183_v48 = vsel %vm1180_vm13, %v1182_v19, %v1178_v45  ;;  %v1163_v53 = vsel %vm1162_vm2, %v1889_v58, %v1159_v46 }
 0x53e   : > { %v1184_v15 = vmul.f32 %v2579_v50, %v1183_v48  ;;  %1734 = vmatmul.msk.bf16.vlgmr.msra.gmra.mxu3 %vm971_vm15, %v1304_v51  ;;  %v1168_v36 = vsel %vm1165_vm3, %v1167_v16, %v1163_v53 }
 0x53f   : > { %v1421_v23 = vpop.permute.xlu0 %1420  ;;  %v1169_v50 = vmul.f32 %v2581_v57, %v1168_v36  ;;  %v1414_v57 = vunpack.c.l.b16 %v1270_v62  ;;  %v1570_v62 = vld [vmem:[%s2853_s10 + $0x10] sm:$0xff] }
 0x540   : > { %v1266_v59 = vpack.c.bf16 %v1184_v15, %v1184_v15  ;;  %1433 = vmatpush.bf16.msrb.mxu3 %v1421_v23 }
 0x541   : > { %v1265_v26 = vpack.c.bf16 %v1169_v50, %v1169_v50  ;;  %v1416_v10 = vpack.c.b16 %v1415_v25, %v1414_v57  ;;  %v1569_v25 = vld [vmem:[%s2853_s10 + $0x8] sm:$0xff]  ;;  %v1568_v57 = vld [vmem:[%s2853_s10] sm:$0xff] }
 0x542   : > { %v1358_v6 = vunpack.c.l.b16 %v1266_v59  ;;  %s1609_s14 = scalar_lea.hbm %s2905_s13, %s2167_s25 }
 0x543   : > { %v1331_v29 = vunpack.c.l.b16 %v1265_v26  ;;  %v1573_v26 = vld [vmem:[%s2853_s10 + $0x28] sm:$0xff]  ;;  %s1613_s15 = sshll.u32 %s1609_s14, 4  ;;  %s1614_s15 = int_to_ptr.hbm [resolvable:$true] %s1613_s15 }
 0x544   : > { %v1337_v20 = vpop.permute.xlu1 %1336  ;;  %v1360_v7 = vpack.c.b16 %v1359_v54, %v1358_v6  ;;  %s2002_s16 = sshra.s32 %s1614_s15, 4  ;;  %s2003_s16 = int_to_ptr.hbm [resolvable:$true] %s2002_s16 }
 0x545   : > { %1349 = vmatpush.bf16.msra.mxu0 %v1337_v20  ;;  %v1332_v38 = vpack.c.b16 %v1331_v29, %v1330_v61  ;;  %v1572_v61 = vld [vmem:[%s2853_s10 + $0x20] sm:$0xff]  ;;  %v1571_v29 = vld [vmem:[%s2853_s10 + $0x18] sm:$0xff]  ;;  %s2004_s18 = scalar_lea.hbm %s2003_s16, 1  ;;  %p2009_p9 = scmp.lt.s32.totalorder %s2003_s16, %s2905_s13 }
 0x546   : > { %1736 = vmatmul.msk.bf16.vlgmr.msra.gmra.mxu1 %vm971_vm15, %v1360_v7  ;;  %p2005_p1 = scmp.ne.s32.totalorder %s2003_s16, %s2004_s18 }
 0x548   : > { %1735 = vmatmul.msk.bf16.vlgmr.msra.gmra.mxu0 %vm971_vm15, %v1332_v38  ;;  %p2006_p4 = pnand %p2005_p1, %p2216_p7 }
 0x549   : > { %1588 = vmatpush.msrb.mxu0 %v1573_v26 }
 0x54a   : > { %p2007_p8 = pneg %p2006_p4 }
 0x54b   : > { %v1295_v9 = vpop.f32.mrf.mxu2  ;;  %1589 = vmatpush.msrb.mxu0 %v1572_v61 }
 0x54d   : > { %1590 = vmatpush.msrb.mxu0 %v1571_v29 }
 0x54e   : > { %1738 = vmatmul.msk.bf16.vlgmr.msrb.gmra.mxu3 %vm971_vm15, %v1416_v10 }
 0x54f   : > { %1591 = vmatpush.msrb.mxu0 %v1570_v62 }
 0x551   : > { %1592 = vmatpush.msrb.mxu0 %v1569_v25 }
 0x553   : > { %v1297_v12 = vpop.f32.mrf.mxu2  ;;  %1593 = vmatpush.msrb.mxu0 %v1568_v57 }
 0x5b1   : > { %v1407_v52 = vpop.f32.mrf.mxu2 }
 0x5b2   : > { %1466 = vrot.lane.b32.xlu0 %v1407_v52, %s2075_s4 }
 0x5b9   : > { %v1409_v3 = vpop.f32.mrf.mxu2 }
 0x5c1   : > { %v1323_v13 = vpop.f32.mrf.mxu3 }
 0x5c2   : > { %1442 = vrot.lane.b32.xlu0 %v1323_v13, %s2076_s28 }
 0x5c3   : > { %v1379_v14 = vpop.f32.mrf.mxu1 }
 0x5c5   : > { %v1351_v63 = vpop.f32.mrf.mxu0 }
 0x5c6   : > { %1450 = vrot.lane.b32.xlu2 %v1351_v63, %s2077_s0 }
 0x5c9   : > { %v1325_v58 = vpop.f32.mrf.mxu3 }
 0x5ca   : > { %1444 = vrot.lane.b32.xlu1 %v1325_v58, %s2076_s28 }
 0x5cb   : > { %v1381_v17 = vpop.f32.mrf.mxu1 }
 0x5cd   : > { %v1353_v4 = vpop.f32.mrf.mxu0 }
 0x5ce   : > { %1460 = vrot.lane.b32.xlu2 %v1381_v17, %s2078_s20  ;;  %1452 = vrot.lane.b32.xlu0 %v1353_v4, %s2077_s0  ;;  %v2080_v17 = vmov 16.0   ;;  %v1826_v4 = vld [vmem:[%s2851_s8] ss:$0 sm:$0xff] }
 0x5d1   : > { %v1435_v8 = vpop.f32.mrf.mxu3 }
 0x5d2   : > { %1458 = vrot.lane.b32.xlu1 %v1379_v14, %s2078_s20 }
 0x5d6   : > { %1474 = vrot.lane.b32.xlu2 %v1435_v8, %s2079_s11 }
 0x5d9   : > { %v1437_v55 = vpop.f32.mrf.mxu3 }
 0x5da   : > { %1468 = vrot.lane.b32.xlu1 %v1409_v3, %s2075_s4  ;;  %1476 = vrot.lane.b32.xlu0 %v1437_v55, %s2079_s11  ;;  %s2008_s4 = scalar_lea.hbm %s2905_s13, 2 }
 0x5db   : > { %p2010_p10 = scmp.lt.s32.totalorder %s2008_s4, %s2004_s18 }
 0x5dd   : > { %p2011_p2 = por %p2010_p10, %p2009_p9 }
 0x5df   : > { %p2012_p11 = pnand %p2011_p2, %p2007_p8 }
 0x620   : > { %v1451_v11 = vpop.permute.xlu2 %1450 }
 0x624   : > { %v1467_v41 = vpop.permute.xlu0 %1466 }
 0x628   : > { %v1461_v27 = vpop.permute.xlu2 %1460 }
 0x630   : > { %v1475_v24 = vpop.permute.xlu2 %1474 }
 0x634   : > { %v1443_v33 = vpop.permute.xlu0 %1442 }
 0x635   : > { %v1480_v1 = vsel %vm820_vm14, %v1295_v9, %v1443_v33 }
 0x636   : > { %v1482_v22 = vsel %vm971_vm15, %v1480_v1, %v1451_v11  ;;  %v1827_v11 = vld [vmem:[%s2852_s9] ss:$0 sm:$0xff] }
 0x63c   : > { %v1445_v21 = vpop.permute.xlu1 %1444 }
 0x63d   : > { %v1481_v31 = vsel %vm820_vm14, %v1297_v12, %v1445_v21 }
 0x640   : > { %v1453_v18 = vpop.permute.xlu0 %1452 }
 0x641   : > { %v1483_v35 = vsel %vm971_vm15, %v1481_v31, %v1453_v18 }
 0x642   : > { %v1486_v19 = vsel %vm1484_vm5, %v1483_v35, %v1461_v27 }
 0x644   : > { %v1459_v39 = vpop.permute.xlu1 %1458 }
 0x645   : > { %v1485_v42 = vsel %vm1484_vm5, %v1482_v22, %v1459_v39 }
 0x646   : > { %v1488_v28 = vsel %vm1487_vm4, %v1485_v42, %v1467_v41 }
 0x647   : > { %v1491_v30 = vsel %vm1490_vm7, %v1488_v28, %v1475_v24 }
 0x648   : > { %v1493_v0 = vadd.f32 %v1896_v34, %v1491_v30 }
 0x64a   : > { %v1497_v40 = vsel %vm511_vm0, %v1493_v0, 0.0 }
 0x64b   : > { %1498 = vadd.xlane.f32.xlu1 %v1497_v40 }
 0x64c   : > { %v1477_v43 = vpop.permute.xlu0 %1476  ;;  %v1469_v45 = vpop.permute.xlu1 %1468 }
 0x64d   : > { %v1489_v46 = vsel %vm1487_vm4, %v1486_v19, %v1469_v45 }
 0x64e   : > { %v1492_v51 = vsel %vm1490_vm7, %v1489_v46, %v1477_v43 }
 0x64f   : > { %v1494_v47 = vadd.f32 %v1897_v2, %v1492_v51  ;;  %v1574_v2 = vld [vmem:[%s2906_s23] sm:$0x1] }
 0x651   : > { %v1500_v48 = vsel %vm511_vm0, %v1494_v47, 0.0 }
 0x652   : > { %1501 = vadd.xlane.f32.xlu2 %v1500_v48 }
 0x6be   : > { %v1499_v16 = vpop.xlane.xlu1 %1498 }
 0x6bf   : > { %v1503_v49 = vmul.f32 %v1499_v16, %v2332_v44 }
 0x6c1   : > { %v1505_v15 = vsub.f32 %v1493_v0, %v1503_v49 }
 0x6c3   : > { %v1507_v53 = vmul.f32 %v1505_v15, %v1505_v15 }
 0x6c5   : > { %v1502_v5 = vpop.xlane.xlu2 %1501  ;;  %v1509_v36 = vsel %vm511_vm0, %v1507_v53, 0.0 }
 0x6c6   : > { %v1504_v23 = vmul.f32 %v1502_v5, %v2332_v44  ;;  %1510 = vadd.xlane.f32.xlu0 %v1509_v36 }
 0x6c8   : > { %v1506_v32 = vsub.f32 %v1494_v47, %v1504_v23 }
 0x6ca   : > { %v1508_v56 = vmul.f32 %v1506_v32, %v1506_v32 }
 0x6cc   : > { %v1512_v59 = vsel %vm511_vm0, %v1508_v56, 0.0 }
 0x6cd   : > { %1513 = vadd.xlane.f32.xlu1 %v1512_v59 }
 0x739   : > { %v1511_v50 = vpop.xlane.xlu0 %1510 }
 0x73a   : > { %v1515_v60 = vmul.f32 %v1511_v50, %v2332_v44 }
 0x73c   : > { %v1517_v54 = vadd.f32 1e-05, %v1515_v60 }
 0x73e   : > { %1890 = vrsqrt.f32 %v1517_v54  ;;  %vm1525_vm15 = vweird.f32 %v1517_v54 }
 0x740   : > { %v1514_v6 = vpop.xlane.xlu1 %1513 }
 0x741   : > { %v1516_v37 = vmul.f32 %v1514_v6, %v2332_v44 }
 0x743   : > { %v1518_v20 = vadd.f32 1e-05, %v1516_v37 }
 0x744   : > { %v1891_v7 = vpop.eup %1890 }
 0x745   : > { %v1520_v38 = vmul.f32 %v1891_v7, %v1517_v54  ;;  %1892 = vrsqrt.f32 %v1518_v20  ;;  %vm1526_vm14 = vweird.f32 %v1891_v7  ;;  %vm1535_vm10 = vweird.f32 %v1518_v20 }
 0x746   : > { %vm1527_vm8 = vmor %vm1525_vm15, %vm1526_vm14  ;;  %1894 = vrcp.f32 %v2080_v17 }
 0x747   : > { %v1521_v44 = vmul.f32 %v1891_v7, %v1520_v38 }
 0x749   : > { %v1522_v10 = vmul.f32 0.5, %v1521_v44 }
 0x74b   : > { %v1893_v9 = vpop.eup %1892  ;;  %v1523_v12 = vsub.f32 1.5, %v1522_v10 }
 0x74c   : > { %v1530_v52 = vmul.f32 %v1893_v9, %v1518_v20  ;;  %vm1536_vm9 = vweird.f32 %v1893_v9  ;;  %v1895_v27 = vpop.eup %1894 }
 0x74d   : > { %v1524_v13 = vmul.f32 %v1891_v7, %v1523_v12  ;;  %vm1537_vm11 = vmor %vm1535_vm10, %vm1536_vm9  ;;  %v1561_v22 = vmul.f32 16.0, %v1895_v27  ;;  %vm1565_vm6 = vweird.f32 %v1895_v27 }
 0x74e   : > { %v1531_v14 = vmul.f32 %v1893_v9, %v1530_v52 }
 0x74f   : > { %v1528_v63 = vsel %vm1527_vm8, %v1891_v7, %v1524_v13  ;;  %v1562_v28 = vsub.f32 1.0, %v1561_v22 }
 0x750   : > { %v1532_v58 = vmul.f32 0.5, %v1531_v14  ;;  %v1539_v8 = vmul.f32 %v1528_v63, %v1505_v15 }
 0x751   : > { %v1563_v34 = vmul.f32 %v1895_v27, %v1562_v28 }
 0x752   : > { %v1533_v3 = vsub.f32 1.5, %v1532_v58  ;;  %v1544_v41 = vmul.f32 %v1826_v4, %v1539_v8 }
 0x753   : > { %v1564_v40 = vadd.f32 %v1895_v27, %v1563_v34 }
 0x754   : > { %v1534_v55 = vmul.f32 %v1893_v9, %v1533_v3  ;;  %v1549_v1 = vadd.f32 %v1827_v11, %v1544_v41 }
 0x755   : > { %v1566_v45 = vsel %vm1565_vm6, %v1895_v27, %v1564_v40 }
 0x756   : > { %v1538_v33 = vsel %vm1537_vm11, %v1893_v9, %v1534_v55  ;;  %v1551_v42 = vsel %vm511_vm0, %v1549_v1, 0.0 }
 0x757   : > { %v1540_v21 = vmul.f32 %v1538_v33, %v1506_v32 }
 0x759   : > { %v1545_v18 = vmul.f32 %v1826_v4, %v1540_v21 }
 0x75b   : > { %v1550_v39 = vadd.f32 %v1827_v11, %v1545_v18 }
 0x75d   : > { %v1552_v24 = vsel %vm511_vm0, %v1550_v39, 0.0 }
 0x75e   : > { %v1553_v30 = vadd.f32 %v1552_v24, %v1551_v42 }
 0x760   : > { %v1554_v31 = vrot.slane %v1553_v30, 4 }
 0x762   : > { %v1555_v0 = vadd.f32 %v1554_v31, %v1553_v30 }
 0x764   : > { %v1556_v35 = vrot.slane %v1555_v0, 2 }
 0x766   : > { %v1557_v43 = vadd.f32 %v1556_v35, %v1555_v0 }
 0x768   : > { %v1558_v19 = vrot.slane %v1557_v43, 1 }
 0x76a   : > { %v1559_v46 = vadd.f32 %v1558_v19, %v1557_v43 }
 0x76c   : > { %v1567_v51 = vmul.f32 %v1566_v45, %v1559_v46 }
 0x76e   : > { %1739 = vmatmul.msk.f32.vlgmr.msrb.gmra.mxu0 %vm511_vm0, %v1567_v51 }
 0x7eb   : > { %v1595_v47 = vpop.f32.mrf.mxu0 }
 0x7ec   : > { %v1596_v48 = vadd.f32 %v1595_v47, %v1574_v2 }
 0x7ee   : > { %1599 = vst.msk [vmem:[%s490_s12] sm:$0x1] %vm1598_vm12, %v1596_v48 }
 0x7ef   : > { %2015 = shalt.err (!%p2012_p11)
}
 0x7f0   : > { %1752 = dma.vmem_to_hbm [thread:$0]  (%p2216_p7), %s1612_s27, 16, %s1614_s15, %s1601_s17  }
 0x7f1 PF: > { %s2908_s19 = sld [smem:[#allocation13_spill]]  ;;  %p2910_p12 = scmp.ge.s32.totalorder %s2062_s24, 2 }
 0x7f3   : > { %p1766_p13 = pnand %p2910_p12, %p2181_p6 }
 0x7f5   : > { %p1767_p0 = pneg %p1766_p13 }
 0x7f7   : > { %s1625_s11 = sand.u32 1, %s2908_s19  }
 0x7f8   : > { %s1626_s14 = scalar_lea.sflag [#allocation4], %s1625_s11 }
 0x7f9   : > { %2045 = dma.done.wait (%p1767_p0), %s1626_s14, 16  }
 0x7fa   : > { %2047 = vsyncadd (%p1767_p0), %s1626_s14, 4294967280  ;;  %s2911_s24 = sld [smem:[#allocation16_spill]]  ;;  %s2914_s21 = smov %s2054_s22 }
 0x7fb   : > { %s2912_s26 = sld [smem:[#allocation14_spill]] }
 0x7fc   : > { %s2913_s23 = sld [smem:[#allocation17_spill]] }
 0x800   : > { %p28_p3 = scmp.ge.s32.totalorder %s2911_s24, 4  }
 0x801   : > { %s2915_s22 = smov %s2912_s26 }
 0x802   :  { %30 = sbr.rel (!%p28_p3) target bundleno = 12 (0xc), region = 130 }
 0x807   :  { %1631 = vsyncpa [#allocation3], 1 }
 0x808   :  { %1633 = vsyncpa [#allocation3 + $0x1], 1 }
 0x809   :  { %1634 = vsyncpa [#allocation6], 1 }
 0x80a   :  { %1636 = vsyncpa [#allocation6 + $0x1], 1 }
 0x80b   :  { %1637 = vsyncpa [#allocation4], 1 }
 0x80c   :  { %1639 = vsyncpa [#allocation4 + $0x1], 1 }

</bundles_post_ra>
